<compile_context>
chip_gen: v7x
topology: tpu7x:2x2x1
jax: 0.10.0
libtpu: 0.0.40
codegen_flags: <defaults>
</compile_context>

<pallas_src>
import jax
import jax.numpy as jnp
from jax.experimental import pallas as pl
from jax.experimental.pallas import tpu as pltpu


def _round_up(x, m):
    return (x + m - 1) // m * m


# ----------------------------------------------------------------------------
# Packed-bias layout (lane(128)-aligned segment offsets).  Segment widths are
# fixed by the architecture (they do not depend on state_dim / action_dim).
# ----------------------------------------------------------------------------
_BIAS_SEGMENTS = (
    ("bs1", 200),   # [ls1_b | ls1_q2_b]
    ("ba1", 80),    # [la1_b | la1_q2_b]
    ("bs2", 80),    # [ls2_b | ls2_q2_b]
    ("ba2", 80),    # [la2_b | la2_q2_b]
    ("b3h1", 100),  # l3_b
    ("b3h2", 100),  # l3_q2_b
    ("b4h1", 20),   # l4_b
    ("b4h2", 20),   # l4_q2_b
    ("b5", 128),    # [l5_b, l5_q2_b, 0...] lane-padded
)
_B_OFF = {}
_off = 0
for _name, _n in _BIAS_SEGMENTS:
    _B_OFF[_name] = _off
    _off = _round_up(_off + _n, 128)
_B_TOTAL = _off            # 1280 f32 = 5 KB


# ----------------------------------------------------------------------------
# Kernel
# ----------------------------------------------------------------------------
def critic1_kernel(x_ref, u_ref, ws1_ref, wa1_ref, ws2_ref, wa2_ref,
                   w3_ref, w4_ref, w5_ref, b_ref, out_ref):
    f32 = jnp.float32

    def bias(name, n):
        off = _B_OFF[name]
        return b_ref[:, off:off + n]            # (1, n), broadcast over batch

    x = x_ref[...]                              # (B, state_dim)
    u = u_ref[...]                              # (B, action_dim)
    d = x.shape[1] // 4

    # ---- action branch, both heads fused along lanes: [Q1 | Q2] -----------
    ha = jnp.maximum(
        jnp.dot(u, wa1_ref[...], preferred_element_type=f32) + bias("ba1", 80),
        0.0)
    ha = jnp.maximum(
        jnp.dot(ha, wa2_ref[...], preferred_element_type=f32) + bias("ba2", 80),
        0.0)                                    # (B, 80): lanes 0-39 Q1, 40-79 Q2

    w3h1 = w3_ref[0]                            # (200, 100)
    w3h2 = w3_ref[1]                            # (200, 100)

    # Layer-3 pre-activation accumulators.  The reference's
    # concat([x1,x2,x3,x4,u1]) @ l3 becomes a sum of 5 row-slab dots.
    acc1 = (jnp.dot(ha[:, 0:40], w3h1[160:200, :], preferred_element_type=f32)
            + bias("b3h1", 100))
    acc2 = (jnp.dot(ha[:, 40:80], w3h2[160:200, :], preferred_element_type=f32)
            + bias("b3h2", 100))

    # ---- 4 state chunks through shared ls1/ls2 (heads fused along lanes) --
    for i in range(4):
        xi = x[:, i * d:(i + 1) * d]            # (B, d)
        h = jnp.maximum(
            jnp.dot(xi, ws1_ref[...], preferred_element_type=f32)
            + bias("bs1", 200), 0.0)            # (B, 200): lanes 0-99 Q1
        h = jnp.maximum(
            jnp.dot(h, ws2_ref[...], preferred_element_type=f32)
            + bias("bs2", 80), 0.0)             # (B, 80): lanes 0-39 Q1
        acc1 = acc1 + jnp.dot(h[:, 0:40], w3h1[i * 40:(i + 1) * 40, :],
                              preferred_element_type=f32)
        acc2 = acc2 + jnp.dot(h[:, 40:80], w3h2[i * 40:(i + 1) * 40, :],
                              preferred_element_type=f32)

    c1 = jnp.maximum(acc1, 0.0)                 # (B, 100)
    c2 = jnp.maximum(acc2, 0.0)                 # (B, 100)

    # ---- layer 4, per head --------------------------------------------------
    c1 = jnp.maximum(
        jnp.dot(c1, w4_ref[0], preferred_element_type=f32) + bias("b4h1", 20),
        0.0)                                    # (B, 20)
    c2 = jnp.maximum(
        jnp.dot(c2, w4_ref[1], preferred_element_type=f32) + bias("b4h2", 20),
        0.0)                                    # (B, 20)

    # ---- layer 5, fused heads, lane-padded output (B, 128) -----------------
    cc = jnp.concatenate([c1, c2], axis=1)      # (B, 40)
    out_ref[...] = (jnp.dot(cc, w5_ref[...], preferred_element_type=f32)
                    + bias("b5", 128)).astype(out_ref.dtype)


# ----------------------------------------------------------------------------
# Parameter construction (PyTorch-style per-layer params) and wrapper-side
# fusion into the packed kernel operands.
# ----------------------------------------------------------------------------
def init_linear_params(key, in_f, out_f):
    """PyTorch default init U(-1/sqrt(in), 1/sqrt(in)); weight stored
    transposed as (in, out); bias as (1, out)."""
    kw, kb = jax.random.split(key)
    bound = 1.0 / jnp.sqrt(jnp.float32(in_f))
    w = jax.random.uniform(kw, (in_f, out_f), jnp.float32, -bound, bound)
    b = jax.random.uniform(kb, (1, out_f), jnp.float32, -bound, bound)
    return w, b


def make_critic1_params(key, state_dim, action_dim):
    d = state_dim // 4
    layer_dims = [
        (d, 100), (100, 40), (action_dim, 40), (40, 40),
        (200, 100), (100, 20), (20, 1),
    ]
    all_dims = layer_dims + layer_dims          # Q1 head then Q2 head
    keys = jax.random.split(key, len(all_dims))
    params = []
    for k, (fi, fo) in zip(keys, all_dims):
        w, b = init_linear_params(k, fi, fo)
        params += [w, b]
    return params                               # 28 arrays


def _block_diag(blocks):
    rows = sum(b.shape[0] for b in blocks)
    cols = sum(b.shape[1] for b in blocks)
    out = jnp.zeros((rows, cols), jnp.float32)
    r = c = 0
    for blk in blocks:
        out = out.at[r:r + blk.shape[0], c:c + blk.shape[1]].set(blk)
        r += blk.shape[0]
        c += blk.shape[1]
    return out


def fuse_critic1_params(params):
    """Pack the 28 per-layer arrays into 8 kernel operands (no large
    structural-zero blocks)."""
    (ls1_w, ls1_b, ls2_w, ls2_b, la1_w, la1_b, la2_w, la2_b,
     l3_w, l3_b, l4_w, l4_b, l5_w, l5_b,
     ls1q_w, ls1q_b, ls2q_w, ls2q_b, la1q_w, la1q_b, la2q_w, la2q_b,
     l3q_w, l3q_b, l4q_w, l4q_b, l5q_w, l5q_b) = params

    ws1 = jnp.concatenate([ls1_w, ls1q_w], axis=1)        # (d, 200)
    wa1 = jnp.concatenate([la1_w, la1q_w], axis=1)        # (A, 80)
    ws2 = _block_diag([ls2_w, ls2q_w])                    # (200, 80)
    wa2 = _block_diag([la2_w, la2q_w])                    # (80, 80)
    w3 = jnp.stack([l3_w, l3q_w], axis=0)                 # (2, 200, 100)
    w4 = jnp.stack([l4_w, l4q_w], axis=0)                 # (2, 100, 20)
    w5 = jnp.zeros((40, 128), jnp.float32)
    w5 = w5.at[0:20, 0:1].set(l5_w).at[20:40, 1:2].set(l5q_w)

    segs = {
        "bs1": jnp.concatenate([ls1_b, ls1q_b], axis=1),
        "ba1": jnp.concatenate([la1_b, la1q_b], axis=1),
        "bs2": jnp.concatenate([ls2_b, ls2q_b], axis=1),
        "ba2": jnp.concatenate([la2_b, la2q_b], axis=1),
        "b3h1": l3_b, "b3h2": l3q_b,
        "b4h1": l4_b, "b4h2": l4q_b,
        "b5": jnp.zeros((1, 128), jnp.float32)
               .at[:, 0:1].set(l5_b).at[:, 1:2].set(l5q_b),
    }
    b_packed = jnp.zeros((1, _B_TOTAL), jnp.float32)
    for name, n in _BIAS_SEGMENTS:
        off = _B_OFF[name]
        b_packed = b_packed.at[:, off:off + n].set(segs[name])

    return (ws1, wa1, ws2, wa2, w3, w4, w5, b_packed)


# ----------------------------------------------------------------------------
# Wrapper
# ----------------------------------------------------------------------------
def critic1_forward(x, u, fused_params):
    ws1, wa1, ws2, wa2, w3, w4, w5, b_packed = fused_params
    B, S = x.shape
    A = u.shape[1]
    d = S // 4
    x = x.astype(jnp.float32)
    u = u.astype(jnp.float32)

    # Batch grid: weights use constant index maps so they stay VMEM-resident
    # across grid steps; batch axis is parallel (engages both v7x TCs).
    block_b = B if B <= 256 else 256
    grid = (pl.cdiv(B, block_b),)

    row_map = lambda i: (i, 0)
    const2 = lambda i: (0, 0)
    const3 = lambda i: (0, 0, 0)

    weights = (ws1, wa1, ws2, wa2, w3, w4, w5, b_packed)
    weight_bytes = sum(int(a.size) * a.dtype.itemsize for a in weights)
    io_bytes = weight_bytes + (B * (S + A) + B * 128) * 4
    flops = 2 * B * (4 * d * 200 + A * 80 + 4 * 200 * 80 + 80 * 80
                     + 2 * 5 * 40 * 100 + 2 * 100 * 20 + 40 * 128)

    out = pl.pallas_call(
        critic1_kernel,
        out_shape=jax.ShapeDtypeStruct((B, 128), jnp.float32),
        grid=grid,
        in_specs=[
            pl.BlockSpec((block_b, S), row_map),       # x
            pl.BlockSpec((block_b, A), row_map),       # u
            pl.BlockSpec(ws1.shape, const2),           # ws1
            pl.BlockSpec(wa1.shape, const2),           # wa1
            pl.BlockSpec(ws2.shape, const2),           # ws2
            pl.BlockSpec(wa2.shape, const2),           # wa2
            pl.BlockSpec(w3.shape, const3),            # w3 (2,200,100)
            pl.BlockSpec(w4.shape, const3),            # w4 (2,100,20)
            pl.BlockSpec(w5.shape, const2),            # w5 (40,128)
            pl.BlockSpec(b_packed.shape, const2),      # packed biases
        ],
        out_specs=pl.BlockSpec((block_b, 128), row_map),
        compiler_params=pltpu.CompilerParams(
            dimension_semantics=("parallel",)),
        cost_estimate=pl.CostEstimate(flops=flops, transcendentals=0,
                                      bytes_accessed=io_bytes),
    )(x, u, ws1, wa1, ws2, wa2, w3, w4, w5, b_packed)

    return out[:, 0:1], out[:, 1:2]


# ----------------------------------------------------------------------------
# Pure-JAX reference mirroring the PyTorch forward exactly (unfused params).
# ----------------------------------------------------------------------------
def critic1_reference(x, u, params):
    (ls1_w, ls1_b, ls2_w, ls2_b, la1_w, la1_b, la2_w, la2_b,
     l3_w, l3_b, l4_w, l4_b, l5_w, l5_b,
     ls1q_w, ls1q_b, ls2q_w, ls2q_b, la1q_w, la1q_b, la2q_w, la2q_b,
     l3q_w, l3q_b, l4q_w, l4q_b, l5q_w, l5q_b) = params

    def relu(v):
        return jnp.maximum(v, 0.0)

    def head(w_s1, b_s1, w_s2, b_s2, w_a1, b_a1, w_a2, b_a2,
             w3, b3, w4, b4, w5, b5):
        d = x.shape[1] // 4
        hs = []
        for i in range(4):
            xi = x[:, i * d:(i + 1) * d]
            h = relu(xi @ w_s1 + b_s1)
            h = relu(h @ w_s2 + b_s2)
            hs.append(h)
        uh = relu(u @ w_a1 + b_a1)
        uh = relu(uh @ w_a2 + b_a2)
        c = jnp.concatenate(hs + [uh], axis=1)
        c = relu(c @ w3 + b3)
        c = relu(c @ w4 + b4)
        return c @ w5 + b5

    q1 = head(ls1_w, ls1_b, ls2_w, ls2_b, la1_w, la1_b, la2_w, la2_b,
              l3_w, l3_b, l4_w, l4_b, l5_w, l5_b)
    q2 = head(ls1q_w, ls1q_b, ls2q_w, ls2q_b, la1q_w, la1q_b, la2q_w, la2q_b,
              l3q_w, l3q_b, l4q_w, l4q_b, l5q_w, l5q_b)
    return q1, q2


if __name__ == "__main__":
    key = jax.random.PRNGKey(0)
    k_params, k_x, k_u = jax.random.split(key, 3)

    batch = 8
    state_dim = 16   # must be divisible by 4 (forward uses x.chunk(4, 1))
    action_dim = 8

    params = make_critic1_params(k_params, state_dim, action_dim)
    fused = fuse_critic1_params(params)

    x = jax.random.normal(k_x, (batch, state_dim), jnp.float32)
    u = jax.random.normal(k_u, (batch, action_dim), jnp.float32)

    q1, q2 = critic1_forward(x, u, fused)
    q1 = jax.block_until_ready(q1)
    q2 = jax.block_until_ready(q2)

    q1_ref, q2_ref = critic1_reference(x, u, params)
    assert q1.shape == (batch, 1) and q2.shape == (batch, 1)
    assert jnp.allclose(q1, q1_ref, atol=1e-4, rtol=1e-4)
    assert jnp.allclose(q2, q2_ref, atol=1e-4, rtol=1e-4)

    print("KERNEL_OK")
</pallas_src>

<mosaic_0001>
module attributes {stable_mosaic.version = 11 : i64} {
  func.func @critic1_kernel(%arg0: i32, %arg1: memref<8x16xf32, #tpu.memory_space<vmem>>, %arg2: memref<8x8xf32, #tpu.memory_space<vmem>>, %arg3: memref<4x200xf32, #tpu.memory_space<vmem>>, %arg4: memref<8x80xf32, #tpu.memory_space<vmem>>, %arg5: memref<200x80xf32, #tpu.memory_space<vmem>>, %arg6: memref<80x80xf32, #tpu.memory_space<vmem>>, %arg7: memref<2x200x100xf32, #tpu.memory_space<vmem>>, %arg8: memref<2x100x20xf32, #tpu.memory_space<vmem>>, %arg9: memref<40x128xf32, #tpu.memory_space<vmem>>, %arg10: memref<1x1280xf32, #tpu.memory_space<vmem>>, %arg11: memref<8x128xf32, #tpu.memory_space<vmem>>) attributes {dimension_semantics = [#tpu.dimension_semantics<parallel>], iteration_bounds = array<i64: 1>, scalar_prefetch = 0 : i64, scratch_operands = 0 : i64, tpu.core_type = #tpu.core_type<tc>, window_params = [{transform_indices = @transform_0, window_bounds = array<i64: 8, 16>}, {transform_indices = @transform_1, window_bounds = array<i64: 8, 8>}, {pipeline_mode = #tpu.pipeline_mode<synchronous>, transform_indices = @transform_2, window_bounds = array<i64: 4, 200>}, {pipeline_mode = #tpu.pipeline_mode<synchronous>, transform_indices = @transform_3, window_bounds = array<i64: 8, 80>}, {pipeline_mode = #tpu.pipeline_mode<synchronous>, transform_indices = @transform_4, window_bounds = array<i64: 200, 80>}, {pipeline_mode = #tpu.pipeline_mode<synchronous>, transform_indices = @transform_5, window_bounds = array<i64: 80, 80>}, {pipeline_mode = #tpu.pipeline_mode<synchronous>, transform_indices = @transform_6, window_bounds = array<i64: 2, 200, 100>}, {pipeline_mode = #tpu.pipeline_mode<synchronous>, transform_indices = @transform_7, window_bounds = array<i64: 2, 100, 20>}, {pipeline_mode = #tpu.pipeline_mode<synchronous>, transform_indices = @transform_8, window_bounds = array<i64: 40, 128>}, {pipeline_mode = #tpu.pipeline_mode<synchronous>, transform_indices = @transform_9, window_bounds = array<i64: 1, 1280>}, {transform_indices = @transform_10, window_bounds = array<i64: 8, 128>}]} {
    %c0 = arith.constant 0 : index
    %c0_0 = arith.constant 0 : index
    %0 = vector.load %arg1[%c0, %c0_0] : memref<8x16xf32, #tpu.memory_space<vmem>>, vector<8x16xf32>
    %c0_1 = arith.constant 0 : index
    %c0_2 = arith.constant 0 : index
    %1 = vector.load %arg2[%c0_1, %c0_2] : memref<8x8xf32, #tpu.memory_space<vmem>>, vector<8x8xf32>
    %c0_3 = arith.constant 0 : index
    %c0_4 = arith.constant 0 : index
    %2 = vector.load %arg4[%c0_3, %c0_4] : memref<8x80xf32, #tpu.memory_space<vmem>>, vector<8x80xf32>
    %cst = arith.constant dense<0.000000e+00> : vector<8x80xf32>
    %3 = tpu.matmul %1, %2, %cst {dimension_numbers = #tpu.dot_dimension_numbers<[1], [0], [0], [1], [0, 0, 1, 1], [], []>} : vector<8x8xf32>, vector<8x80xf32>, vector<8x80xf32> -> vector<8x80xf32>
    %c0_5 = arith.constant 0 : index
    %c256 = arith.constant 256 : index
    %4 = vector.load %arg10[%c0_5, %c256] : memref<1x1280xf32, #tpu.memory_space<vmem>>, vector<1x80xf32>
    %5 = vector.broadcast %4 : vector<1x80xf32> to vector<8x80xf32>
    %6 = arith.addf %3, %5 : vector<8x80xf32>
    %cst_6 = arith.constant 0.000000e+00 : f32
    %7 = vector.broadcast %cst_6 : f32 to vector<8x80xf32>
    %8 = arith.maximumf %6, %7 : vector<8x80xf32>
    %c0_7 = arith.constant 0 : index
    %c0_8 = arith.constant 0 : index
    %9 = vector.load %arg6[%c0_7, %c0_8] : memref<80x80xf32, #tpu.memory_space<vmem>>, vector<80x80xf32>
    %cst_9 = arith.constant dense<0.000000e+00> : vector<8x80xf32>
    %10 = tpu.matmul %8, %9, %cst_9 {dimension_numbers = #tpu.dot_dimension_numbers<[1], [0], [0], [1], [0, 0, 1, 1], [], []>} : vector<8x80xf32>, vector<80x80xf32>, vector<8x80xf32> -> vector<8x80xf32>
    %c0_10 = arith.constant 0 : index
    %c512 = arith.constant 512 : index
    %11 = vector.load %arg10[%c0_10, %c512] : memref<1x1280xf32, #tpu.memory_space<vmem>>, vector<1x80xf32>
    %12 = vector.broadcast %11 : vector<1x80xf32> to vector<8x80xf32>
    %13 = arith.addf %10, %12 : vector<8x80xf32>
    %cst_11 = arith.constant 0.000000e+00 : f32
    %14 = vector.broadcast %cst_11 : f32 to vector<8x80xf32>
    %15 = arith.maximumf %13, %14 : vector<8x80xf32>
    %c0_12 = arith.constant 0 : index
    %c0_13 = arith.constant 0 : index
    %c0_14 = arith.constant 0 : index
    %16 = vector.load %arg7[%c0_12, %c0_13, %c0_14] : memref<2x200x100xf32, #tpu.memory_space<vmem>>, vector<1x200x100xf32>
    %17 = vector.shape_cast %16 : vector<1x200x100xf32> to vector<200x100xf32>
    %c1 = arith.constant 1 : index
    %c0_15 = arith.constant 0 : index
    %c0_16 = arith.constant 0 : index
    %18 = vector.load %arg7[%c1, %c0_15, %c0_16] : memref<2x200x100xf32, #tpu.memory_space<vmem>>, vector<1x200x100xf32>
    %19 = vector.shape_cast %18 : vector<1x200x100xf32> to vector<200x100xf32>
    %20 = vector.extract_strided_slice %15 {offsets = [0, 0], sizes = [8, 40], strides = [1, 1]} : vector<8x80xf32> to vector<8x40xf32>
    %21 = vector.extract_strided_slice %17 {offsets = [160, 0], sizes = [40, 100], strides = [1, 1]} : vector<200x100xf32> to vector<40x100xf32>
    %cst_17 = arith.constant dense<0.000000e+00> : vector<8x100xf32>
    %22 = tpu.matmul %20, %21, %cst_17 {dimension_numbers = #tpu.dot_dimension_numbers<[1], [0], [0], [1], [0, 0, 1, 1], [], []>} : vector<8x40xf32>, vector<40x100xf32>, vector<8x100xf32> -> vector<8x100xf32>
    %c0_18 = arith.constant 0 : index
    %c640 = arith.constant 640 : index
    %23 = vector.load %arg10[%c0_18, %c640] : memref<1x1280xf32, #tpu.memory_space<vmem>>, vector<1x100xf32>
    %24 = vector.broadcast %23 : vector<1x100xf32> to vector<8x100xf32>
    %25 = arith.addf %22, %24 : vector<8x100xf32>
    %26 = vector.extract_strided_slice %15 {offsets = [0, 40], sizes = [8, 40], strides = [1, 1]} : vector<8x80xf32> to vector<8x40xf32>
    %27 = vector.extract_strided_slice %19 {offsets = [160, 0], sizes = [40, 100], strides = [1, 1]} : vector<200x100xf32> to vector<40x100xf32>
    %cst_19 = arith.constant dense<0.000000e+00> : vector<8x100xf32>
    %28 = tpu.matmul %26, %27, %cst_19 {dimension_numbers = #tpu.dot_dimension_numbers<[1], [0], [0], [1], [0, 0, 1, 1], [], []>} : vector<8x40xf32>, vector<40x100xf32>, vector<8x100xf32> -> vector<8x100xf32>
    %c0_20 = arith.constant 0 : index
    %c768 = arith.constant 768 : index
    %29 = vector.load %arg10[%c0_20, %c768] : memref<1x1280xf32, #tpu.memory_space<vmem>>, vector<1x100xf32>
    %30 = vector.broadcast %29 : vector<1x100xf32> to vector<8x100xf32>
    %31 = arith.addf %28, %30 : vector<8x100xf32>
    %32 = vector.extract_strided_slice %0 {offsets = [0, 0], sizes = [8, 4], strides = [1, 1]} : vector<8x16xf32> to vector<8x4xf32>
    %c0_21 = arith.constant 0 : index
    %c0_22 = arith.constant 0 : index
    %33 = vector.load %arg3[%c0_21, %c0_22] : memref<4x200xf32, #tpu.memory_space<vmem>>, vector<4x200xf32>
    %cst_23 = arith.constant dense<0.000000e+00> : vector<8x200xf32>
    %34 = tpu.matmul %32, %33, %cst_23 {dimension_numbers = #tpu.dot_dimension_numbers<[1], [0], [0], [1], [0, 0, 1, 1], [], []>} : vector<8x4xf32>, vector<4x200xf32>, vector<8x200xf32> -> vector<8x200xf32>
    %c0_24 = arith.constant 0 : index
    %c0_25 = arith.constant 0 : index
    %35 = vector.load %arg10[%c0_24, %c0_25] : memref<1x1280xf32, #tpu.memory_space<vmem>>, vector<1x200xf32>
    %36 = vector.broadcast %35 : vector<1x200xf32> to vector<8x200xf32>
    %37 = arith.addf %34, %36 : vector<8x200xf32>
    %cst_26 = arith.constant 0.000000e+00 : f32
    %38 = vector.broadcast %cst_26 : f32 to vector<8x200xf32>
    %39 = arith.maximumf %37, %38 : vector<8x200xf32>
    %c0_27 = arith.constant 0 : index
    %c0_28 = arith.constant 0 : index
    %40 = vector.load %arg5[%c0_27, %c0_28] : memref<200x80xf32, #tpu.memory_space<vmem>>, vector<200x80xf32>
    %cst_29 = arith.constant dense<0.000000e+00> : vector<8x80xf32>
    %41 = tpu.matmul %39, %40, %cst_29 {dimension_numbers = #tpu.dot_dimension_numbers<[1], [0], [0], [1], [0, 0, 1, 1], [], []>} : vector<8x200xf32>, vector<200x80xf32>, vector<8x80xf32> -> vector<8x80xf32>
    %c0_30 = arith.constant 0 : index
    %c384 = arith.constant 384 : index
    %42 = vector.load %arg10[%c0_30, %c384] : memref<1x1280xf32, #tpu.memory_space<vmem>>, vector<1x80xf32>
    %43 = vector.broadcast %42 : vector<1x80xf32> to vector<8x80xf32>
    %44 = arith.addf %41, %43 : vector<8x80xf32>
    %cst_31 = arith.constant 0.000000e+00 : f32
    %45 = vector.broadcast %cst_31 : f32 to vector<8x80xf32>
    %46 = arith.maximumf %44, %45 : vector<8x80xf32>
    %47 = vector.extract_strided_slice %46 {offsets = [0, 0], sizes = [8, 40], strides = [1, 1]} : vector<8x80xf32> to vector<8x40xf32>
    %48 = vector.extract_strided_slice %17 {offsets = [0, 0], sizes = [40, 100], strides = [1, 1]} : vector<200x100xf32> to vector<40x100xf32>
    %cst_32 = arith.constant dense<0.000000e+00> : vector<8x100xf32>
    %49 = tpu.matmul %47, %48, %cst_32 {dimension_numbers = #tpu.dot_dimension_numbers<[1], [0], [0], [1], [0, 0, 1, 1], [], []>} : vector<8x40xf32>, vector<40x100xf32>, vector<8x100xf32> -> vector<8x100xf32>
    %50 = arith.addf %25, %49 : vector<8x100xf32>
    %51 = vector.extract_strided_slice %46 {offsets = [0, 40], sizes = [8, 40], strides = [1, 1]} : vector<8x80xf32> to vector<8x40xf32>
    %52 = vector.extract_strided_slice %19 {offsets = [0, 0], sizes = [40, 100], strides = [1, 1]} : vector<200x100xf32> to vector<40x100xf32>
    %cst_33 = arith.constant dense<0.000000e+00> : vector<8x100xf32>
    %53 = tpu.matmul %51, %52, %cst_33 {dimension_numbers = #tpu.dot_dimension_numbers<[1], [0], [0], [1], [0, 0, 1, 1], [], []>} : vector<8x40xf32>, vector<40x100xf32>, vector<8x100xf32> -> vector<8x100xf32>
    %54 = arith.addf %31, %53 : vector<8x100xf32>
    %55 = vector.extract_strided_slice %0 {offsets = [0, 4], sizes = [8, 4], strides = [1, 1]} : vector<8x16xf32> to vector<8x4xf32>
    %c0_34 = arith.constant 0 : index
    %c0_35 = arith.constant 0 : index
    %56 = vector.load %arg3[%c0_34, %c0_35] : memref<4x200xf32, #tpu.memory_space<vmem>>, vector<4x200xf32>
    %cst_36 = arith.constant dense<0.000000e+00> : vector<8x200xf32>
    %57 = tpu.matmul %55, %56, %cst_36 {dimension_numbers = #tpu.dot_dimension_numbers<[1], [0], [0], [1], [0, 0, 1, 1], [], []>} : vector<8x4xf32>, vector<4x200xf32>, vector<8x200xf32> -> vector<8x200xf32>
    %c0_37 = arith.constant 0 : index
    %c0_38 = arith.constant 0 : index
    %58 = vector.load %arg10[%c0_37, %c0_38] : memref<1x1280xf32, #tpu.memory_space<vmem>>, vector<1x200xf32>
    %59 = vector.broadcast %58 : vector<1x200xf32> to vector<8x200xf32>
    %60 = arith.addf %57, %59 : vector<8x200xf32>
    %cst_39 = arith.constant 0.000000e+00 : f32
    %61 = vector.broadcast %cst_39 : f32 to vector<8x200xf32>
    %62 = arith.maximumf %60, %61 : vector<8x200xf32>
    %c0_40 = arith.constant 0 : index
    %c0_41 = arith.constant 0 : index
    %63 = vector.load %arg5[%c0_40, %c0_41] : memref<200x80xf32, #tpu.memory_space<vmem>>, vector<200x80xf32>
    %cst_42 = arith.constant dense<0.000000e+00> : vector<8x80xf32>
    %64 = tpu.matmul %62, %63, %cst_42 {dimension_numbers = #tpu.dot_dimension_numbers<[1], [0], [0], [1], [0, 0, 1, 1], [], []>} : vector<8x200xf32>, vector<200x80xf32>, vector<8x80xf32> -> vector<8x80xf32>
    %c0_43 = arith.constant 0 : index
    %c384_44 = arith.constant 384 : index
    %65 = vector.load %arg10[%c0_43, %c384_44] : memref<1x1280xf32, #tpu.memory_space<vmem>>, vector<1x80xf32>
    %66 = vector.broadcast %65 : vector<1x80xf32> to vector<8x80xf32>
    %67 = arith.addf %64, %66 : vector<8x80xf32>
    %cst_45 = arith.constant 0.000000e+00 : f32
    %68 = vector.broadcast %cst_45 : f32 to vector<8x80xf32>
    %69 = arith.maximumf %67, %68 : vector<8x80xf32>
    %70 = vector.extract_strided_slice %69 {offsets = [0, 0], sizes = [8, 40], strides = [1, 1]} : vector<8x80xf32> to vector<8x40xf32>
    %71 = vector.extract_strided_slice %17 {offsets = [40, 0], sizes = [40, 100], strides = [1, 1]} : vector<200x100xf32> to vector<40x100xf32>
    %cst_46 = arith.constant dense<0.000000e+00> : vector<8x100xf32>
    %72 = tpu.matmul %70, %71, %cst_46 {dimension_numbers = #tpu.dot_dimension_numbers<[1], [0], [0], [1], [0, 0, 1, 1], [], []>} : vector<8x40xf32>, vector<40x100xf32>, vector<8x100xf32> -> vector<8x100xf32>
    %73 = arith.addf %50, %72 : vector<8x100xf32>
    %74 = vector.extract_strided_slice %69 {offsets = [0, 40], sizes = [8, 40], strides = [1, 1]} : vector<8x80xf32> to vector<8x40xf32>
    %75 = vector.extract_strided_slice %19 {offsets = [40, 0], sizes = [40, 100], strides = [1, 1]} : vector<200x100xf32> to vector<40x100xf32>
    %cst_47 = arith.constant dense<0.000000e+00> : vector<8x100xf32>
    %76 = tpu.matmul %74, %75, %cst_47 {dimension_numbers = #tpu.dot_dimension_numbers<[1], [0], [0], [1], [0, 0, 1, 1], [], []>} : vector<8x40xf32>, vector<40x100xf32>, vector<8x100xf32> -> vector<8x100xf32>
    %77 = arith.addf %54, %76 : vector<8x100xf32>
    %78 = vector.extract_strided_slice %0 {offsets = [0, 8], sizes = [8, 4], strides = [1, 1]} : vector<8x16xf32> to vector<8x4xf32>
    %c0_48 = arith.constant 0 : index
    %c0_49 = arith.constant 0 : index
    %79 = vector.load %arg3[%c0_48, %c0_49] : memref<4x200xf32, #tpu.memory_space<vmem>>, vector<4x200xf32>
    %cst_50 = arith.constant dense<0.000000e+00> : vector<8x200xf32>
    %80 = tpu.matmul %78, %79, %cst_50 {dimension_numbers = #tpu.dot_dimension_numbers<[1], [0], [0], [1], [0, 0, 1, 1], [], []>} : vector<8x4xf32>, vector<4x200xf32>, vector<8x200xf32> -> vector<8x200xf32>
    %c0_51 = arith.constant 0 : index
    %c0_52 = arith.constant 0 : index
    %81 = vector.load %arg10[%c0_51, %c0_52] : memref<1x1280xf32, #tpu.memory_space<vmem>>, vector<1x200xf32>
    %82 = vector.broadcast %81 : vector<1x200xf32> to vector<8x200xf32>
    %83 = arith.addf %80, %82 : vector<8x200xf32>
    %cst_53 = arith.constant 0.000000e+00 : f32
    %84 = vector.broadcast %cst_53 : f32 to vector<8x200xf32>
    %85 = arith.maximumf %83, %84 : vector<8x200xf32>
    %c0_54 = arith.constant 0 : index
    %c0_55 = arith.constant 0 : index
    %86 = vector.load %arg5[%c0_54, %c0_55] : memref<200x80xf32, #tpu.memory_space<vmem>>, vector<200x80xf32>
    %cst_56 = arith.constant dense<0.000000e+00> : vector<8x80xf32>
    %87 = tpu.matmul %85, %86, %cst_56 {dimension_numbers = #tpu.dot_dimension_numbers<[1], [0], [0], [1], [0, 0, 1, 1], [], []>} : vector<8x200xf32>, vector<200x80xf32>, vector<8x80xf32> -> vector<8x80xf32>
    %c0_57 = arith.constant 0 : index
    %c384_58 = arith.constant 384 : index
    %88 = vector.load %arg10[%c0_57, %c384_58] : memref<1x1280xf32, #tpu.memory_space<vmem>>, vector<1x80xf32>
    %89 = vector.broadcast %88 : vector<1x80xf32> to vector<8x80xf32>
    %90 = arith.addf %87, %89 : vector<8x80xf32>
    %cst_59 = arith.constant 0.000000e+00 : f32
    %91 = vector.broadcast %cst_59 : f32 to vector<8x80xf32>
    %92 = arith.maximumf %90, %91 : vector<8x80xf32>
    %93 = vector.extract_strided_slice %92 {offsets = [0, 0], sizes = [8, 40], strides = [1, 1]} : vector<8x80xf32> to vector<8x40xf32>
    %94 = vector.extract_strided_slice %17 {offsets = [80, 0], sizes = [40, 100], strides = [1, 1]} : vector<200x100xf32> to vector<40x100xf32>
    %cst_60 = arith.constant dense<0.000000e+00> : vector<8x100xf32>
    %95 = tpu.matmul %93, %94, %cst_60 {dimension_numbers = #tpu.dot_dimension_numbers<[1], [0], [0], [1], [0, 0, 1, 1], [], []>} : vector<8x40xf32>, vector<40x100xf32>, vector<8x100xf32> -> vector<8x100xf32>
    %96 = arith.addf %73, %95 : vector<8x100xf32>
    %97 = vector.extract_strided_slice %92 {offsets = [0, 40], sizes = [8, 40], strides = [1, 1]} : vector<8x80xf32> to vector<8x40xf32>
    %98 = vector.extract_strided_slice %19 {offsets = [80, 0], sizes = [40, 100], strides = [1, 1]} : vector<200x100xf32> to vector<40x100xf32>
    %cst_61 = arith.constant dense<0.000000e+00> : vector<8x100xf32>
    %99 = tpu.matmul %97, %98, %cst_61 {dimension_numbers = #tpu.dot_dimension_numbers<[1], [0], [0], [1], [0, 0, 1, 1], [], []>} : vector<8x40xf32>, vector<40x100xf32>, vector<8x100xf32> -> vector<8x100xf32>
    %100 = arith.addf %77, %99 : vector<8x100xf32>
    %101 = vector.extract_strided_slice %0 {offsets = [0, 12], sizes = [8, 4], strides = [1, 1]} : vector<8x16xf32> to vector<8x4xf32>
    %c0_62 = arith.constant 0 : index
    %c0_63 = arith.constant 0 : index
    %102 = vector.load %arg3[%c0_62, %c0_63] : memref<4x200xf32, #tpu.memory_space<vmem>>, vector<4x200xf32>
    %cst_64 = arith.constant dense<0.000000e+00> : vector<8x200xf32>
    %103 = tpu.matmul %101, %102, %cst_64 {dimension_numbers = #tpu.dot_dimension_numbers<[1], [0], [0], [1], [0, 0, 1, 1], [], []>} : vector<8x4xf32>, vector<4x200xf32>, vector<8x200xf32> -> vector<8x200xf32>
    %c0_65 = arith.constant 0 : index
    %c0_66 = arith.constant 0 : index
    %104 = vector.load %arg10[%c0_65, %c0_66] : memref<1x1280xf32, #tpu.memory_space<vmem>>, vector<1x200xf32>
    %105 = vector.broadcast %104 : vector<1x200xf32> to vector<8x200xf32>
    %106 = arith.addf %103, %105 : vector<8x200xf32>
    %cst_67 = arith.constant 0.000000e+00 : f32
    %107 = vector.broadcast %cst_67 : f32 to vector<8x200xf32>
    %108 = arith.maximumf %106, %107 : vector<8x200xf32>
    %c0_68 = arith.constant 0 : index
    %c0_69 = arith.constant 0 : index
    %109 = vector.load %arg5[%c0_68, %c0_69] : memref<200x80xf32, #tpu.memory_space<vmem>>, vector<200x80xf32>
    %cst_70 = arith.constant dense<0.000000e+00> : vector<8x80xf32>
    %110 = tpu.matmul %108, %109, %cst_70 {dimension_numbers = #tpu.dot_dimension_numbers<[1], [0], [0], [1], [0, 0, 1, 1], [], []>} : vector<8x200xf32>, vector<200x80xf32>, vector<8x80xf32> -> vector<8x80xf32>
    %c0_71 = arith.constant 0 : index
    %c384_72 = arith.constant 384 : index
    %111 = vector.load %arg10[%c0_71, %c384_72] : memref<1x1280xf32, #tpu.memory_space<vmem>>, vector<1x80xf32>
    %112 = vector.broadcast %111 : vector<1x80xf32> to vector<8x80xf32>
    %113 = arith.addf %110, %112 : vector<8x80xf32>
    %cst_73 = arith.constant 0.000000e+00 : f32
    %114 = vector.broadcast %cst_73 : f32 to vector<8x80xf32>
    %115 = arith.maximumf %113, %114 : vector<8x80xf32>
    %116 = vector.extract_strided_slice %115 {offsets = [0, 0], sizes = [8, 40], strides = [1, 1]} : vector<8x80xf32> to vector<8x40xf32>
    %117 = vector.extract_strided_slice %17 {offsets = [120, 0], sizes = [40, 100], strides = [1, 1]} : vector<200x100xf32> to vector<40x100xf32>
    %cst_74 = arith.constant dense<0.000000e+00> : vector<8x100xf32>
    %118 = tpu.matmul %116, %117, %cst_74 {dimension_numbers = #tpu.dot_dimension_numbers<[1], [0], [0], [1], [0, 0, 1, 1], [], []>} : vector<8x40xf32>, vector<40x100xf32>, vector<8x100xf32> -> vector<8x100xf32>
    %119 = arith.addf %96, %118 : vector<8x100xf32>
    %120 = vector.extract_strided_slice %115 {offsets = [0, 40], sizes = [8, 40], strides = [1, 1]} : vector<8x80xf32> to vector<8x40xf32>
    %121 = vector.extract_strided_slice %19 {offsets = [120, 0], sizes = [40, 100], strides = [1, 1]} : vector<200x100xf32> to vector<40x100xf32>
    %cst_75 = arith.constant dense<0.000000e+00> : vector<8x100xf32>
    %122 = tpu.matmul %120, %121, %cst_75 {dimension_numbers = #tpu.dot_dimension_numbers<[1], [0], [0], [1], [0, 0, 1, 1], [], []>} : vector<8x40xf32>, vector<40x100xf32>, vector<8x100xf32> -> vector<8x100xf32>
    %123 = arith.addf %100, %122 : vector<8x100xf32>
    %cst_76 = arith.constant 0.000000e+00 : f32
    %124 = vector.broadcast %cst_76 : f32 to vector<8x100xf32>
    %125 = arith.maximumf %119, %124 : vector<8x100xf32>
    %cst_77 = arith.constant 0.000000e+00 : f32
    %126 = vector.broadcast %cst_77 : f32 to vector<8x100xf32>
    %127 = arith.maximumf %123, %126 : vector<8x100xf32>
    %c0_78 = arith.constant 0 : index
    %c0_79 = arith.constant 0 : index
    %c0_80 = arith.constant 0 : index
    %128 = vector.load %arg8[%c0_78, %c0_79, %c0_80] : memref<2x100x20xf32, #tpu.memory_space<vmem>>, vector<1x100x20xf32>
    %129 = vector.shape_cast %128 : vector<1x100x20xf32> to vector<100x20xf32>
    %cst_81 = arith.constant dense<0.000000e+00> : vector<8x20xf32>
    %130 = tpu.matmul %125, %129, %cst_81 {dimension_numbers = #tpu.dot_dimension_numbers<[1], [0], [0], [1], [0, 0, 1, 1], [], []>} : vector<8x100xf32>, vector<100x20xf32>, vector<8x20xf32> -> vector<8x20xf32>
    %c0_82 = arith.constant 0 : index
    %c896 = arith.constant 896 : index
    %131 = vector.load %arg10[%c0_82, %c896] : memref<1x1280xf32, #tpu.memory_space<vmem>>, vector<1x20xf32>
    %132 = vector.broadcast %131 : vector<1x20xf32> to vector<8x20xf32>
    %133 = arith.addf %130, %132 : vector<8x20xf32>
    %cst_83 = arith.constant 0.000000e+00 : f32
    %134 = vector.broadcast %cst_83 : f32 to vector<8x20xf32>
    %135 = arith.maximumf %133, %134 : vector<8x20xf32>
    %c1_84 = arith.constant 1 : index
    %c0_85 = arith.constant 0 : index
    %c0_86 = arith.constant 0 : index
    %136 = vector.load %arg8[%c1_84, %c0_85, %c0_86] : memref<2x100x20xf32, #tpu.memory_space<vmem>>, vector<1x100x20xf32>
    %137 = vector.shape_cast %136 : vector<1x100x20xf32> to vector<100x20xf32>
    %cst_87 = arith.constant dense<0.000000e+00> : vector<8x20xf32>
    %138 = tpu.matmul %127, %137, %cst_87 {dimension_numbers = #tpu.dot_dimension_numbers<[1], [0], [0], [1], [0, 0, 1, 1], [], []>} : vector<8x100xf32>, vector<100x20xf32>, vector<8x20xf32> -> vector<8x20xf32>
    %c0_88 = arith.constant 0 : index
    %c1024 = arith.constant 1024 : index
    %139 = vector.load %arg10[%c0_88, %c1024] : memref<1x1280xf32, #tpu.memory_space<vmem>>, vector<1x20xf32>
    %140 = vector.broadcast %139 : vector<1x20xf32> to vector<8x20xf32>
    %141 = arith.addf %138, %140 : vector<8x20xf32>
    %cst_89 = arith.constant 0.000000e+00 : f32
    %142 = vector.broadcast %cst_89 : f32 to vector<8x20xf32>
    %143 = arith.maximumf %141, %142 : vector<8x20xf32>
    %144 = tpu.concatenate %135, %143 in 1 : vector<8x20xf32>, vector<8x20xf32> -> vector<8x40xf32>
    %c0_90 = arith.constant 0 : index
    %c0_91 = arith.constant 0 : index
    %145 = vector.load %arg9[%c0_90, %c0_91] : memref<40x128xf32, #tpu.memory_space<vmem>>, vector<40x128xf32>
    %cst_92 = arith.constant dense<0.000000e+00> : vector<8x128xf32>
    %146 = tpu.matmul %144, %145, %cst_92 {dimension_numbers = #tpu.dot_dimension_numbers<[1], [0], [0], [1], [0, 0, 1, 1], [], []>} : vector<8x40xf32>, vector<40x128xf32>, vector<8x128xf32> -> vector<8x128xf32>
    %c0_93 = arith.constant 0 : index
    %c1152 = arith.constant 1152 : index
    %147 = vector.load %arg10[%c0_93, %c1152] : memref<1x1280xf32, #tpu.memory_space<vmem>>, vector<1x128xf32>
    %148 = vector.broadcast %147 : vector<1x128xf32> to vector<8x128xf32>
    %149 = arith.addf %146, %148 : vector<8x128xf32>
    %c0_94 = arith.constant 0 : index
    %c0_95 = arith.constant 0 : index
    %150 = vector.load %arg11[%c0_94, %c0_95] : memref<8x128xf32, #tpu.memory_space<vmem>>, vector<8x128xf32>
    tpu.vector_store %arg11[%c0_94, %c0_95], %149 {strides = array<i32>} : memref<8x128xf32, #tpu.memory_space<vmem>>, vector<8x128xf32>,
    return
  }
  func.func @transform_0(%arg0: i32) -> (i32, i32) {
    %c0_i32 = arith.constant 0 : i32
    %c0_i32_0 = arith.constant 0 : i32
    return %arg0, %c0_i32 : i32, i32
  }
  func.func @transform_1(%arg0: i32) -> (i32, i32) {
    %c0_i32 = arith.constant 0 : i32
    %c0_i32_0 = arith.constant 0 : i32
    return %arg0, %c0_i32 : i32, i32
  }
  func.func @transform_2(%arg0: i32) -> (i32, i32) {
    %c0_i32 = arith.constant 0 : i32
    %c0_i32_0 = arith.constant 0 : i32
    %c0_i32_1 = arith.constant 0 : i32
    return %c0_i32, %c0_i32_0 : i32, i32
  }
  func.func @transform_3(%arg0: i32) -> (i32, i32) {
    %c0_i32 = arith.constant 0 : i32
    %c0_i32_0 = arith.constant 0 : i32
    %c0_i32_1 = arith.constant 0 : i32
    return %c0_i32, %c0_i32_0 : i32, i32
  }
  func.func @transform_4(%arg0: i32) -> (i32, i32) {
    %c0_i32 = arith.constant 0 : i32
    %c0_i32_0 = arith.constant 0 : i32
    %c0_i32_1 = arith.constant 0 : i32
    return %c0_i32, %c0_i32_0 : i32, i32
  }
  func.func @transform_5(%arg0: i32) -> (i32, i32) {
    %c0_i32 = arith.constant 0 : i32
    %c0_i32_0 = arith.constant 0 : i32
    %c0_i32_1 = arith.constant 0 : i32
    return %c0_i32, %c0_i32_0 : i32, i32
  }
  func.func @transform_6(%arg0: i32) -> (i32, i32, i32) {
    %c0_i32 = arith.constant 0 : i32
    %c0_i32_0 = arith.constant 0 : i32
    %c0_i32_1 = arith.constant 0 : i32
    %c0_i32_2 = arith.constant 0 : i32
    return %c0_i32, %c0_i32_0, %c0_i32_1 : i32, i32, i32
  }
  func.func @transform_7(%arg0: i32) -> (i32, i32, i32) {
    %c0_i32 = arith.constant 0 : i32
    %c0_i32_0 = arith.constant 0 : i32
    %c0_i32_1 = arith.constant 0 : i32
    %c0_i32_2 = arith.constant 0 : i32
    return %c0_i32, %c0_i32_0, %c0_i32_1 : i32, i32, i32
  }
  func.func @transform_8(%arg0: i32) -> (i32, i32) {
    %c0_i32 = arith.constant 0 : i32
    %c0_i32_0 = arith.constant 0 : i32
    %c0_i32_1 = arith.constant 0 : i32
    return %c0_i32, %c0_i32_0 : i32, i32
  }
  func.func @transform_9(%arg0: i32) -> (i32, i32) {
    %c0_i32 = arith.constant 0 : i32
    %c0_i32_0 = arith.constant 0 : i32
    %c0_i32_1 = arith.constant 0 : i32
    return %c0_i32, %c0_i32_0 : i32, i32
  }
  func.func @transform_10(%arg0: i32) -> (i32, i32) {
    %c0_i32 = arith.constant 0 : i32
    %c0_i32_0 = arith.constant 0 : i32
    return %arg0, %c0_i32 : i32, i32
  }
}

</mosaic_0001>

<bundles_post_ra>
// kernel: tpu_custom_call.1
= control target key start
LH: loop header
LB: loop body
LE: loop exit
PB: predicated region body
PF: predicated region fallthrough
CT: control target
= control target key end

     0   :  { %vm46_vm0 = vcmask 64512   ;;  %v2710_v2 = vmov 0.0   ;;  %vm2711_vm1 = vmmov 0   ;;  %v2712_v6 = vmov 0.0|0.0   ;;  %s3474_s0 = inlined_call_operand.vmem [shape: f32[8,16], index: 0, kind: input, shape index: {}]   ;;  %s3475_s1 = inlined_call_operand.vmem [shape: f32[8,8], index: 1, kind: input, shape index: {}]   ;;  %s3476_s2 = inlined_call_operand.vmem [shape: f32[4,200], index: 2, kind: input, shape index: {}]   ;;  %s3477_s3 = inlined_call_operand.vmem [shape: f32[8,80], index: 3, kind: input, shape index: {}]   ;;  %s3478_s4 = inlined_call_operand.vmem [shape: f32[200,80], index: 4, kind: input, shape index: {}]   ;;  %s3479_s5 = inlined_call_operand.vmem [shape: f32[80,80], index: 5, kind: input, shape index: {}]   ;;  %s3480_s6 = inlined_call_operand.vmem [shape: f32[2,200,100], index: 6, kind: input, shape index: {}]   ;;  %s3481_s7 = inlined_call_operand.vmem [shape: f32[2,100,20], index: 7, kind: input, shape index: {}]   ;;  %s3482_s8 = inlined_call_operand.vmem [shape: f32[40,128], index: 8, kind: input, shape index: {}]   ;;  %s3483_s9 = inlined_call_operand.vmem [shape: f32[1,1280], index: 9, kind: input, shape index: {}]   ;;  %s3484_s10 = inlined_call_operand.hbm [shape: f32[8,128], index: 10, kind: output, shape index: {}]  }
   0x1   :  { %v38_v0 = vld [vmem:[%s3477_s3] sm:$0xff]  ;;  %2169 = vmatprep.subr.mxu0 %v2710_v2  ;;  %2171 = vmatprep.mubr.msk.f32.mxu0 %vm2711_vm1, %v2710_v2  ;;  %v122_v4 = vld [vmem:[%s3479_s5 + $0x8] sm:$0xff]  ;;  %v123_v5 = vld [vmem:[%s3479_s5 + $0x10] sm:$0xff] }
   0x2   :  { %v37_v1 = vld [vmem:[%s3475_s1] sm:$0xff]  ;;  %2170 = vmatpush3.msra.mxu0 %v38_v0  ;;  %2398 = vmatprep.subr.bf16.mxu1 %v2712_v6  ;;  %v124_v8 = vld [vmem:[%s3479_s5 + $0x18] sm:$0xff] }
   0x3   :  { %v121_v3 = vld [vmem:[%s3479_s5] sm:$0xff]  ;;  %2172 = vmatmul.mubr.msk.f32.vlgmr.msra.gmra.mrb[0].mxu0 %vm46_vm0, %v37_v1  ;;  %2194 = vmatprep.mubr.msk.f32.mxu1 %vm2711_vm1, %v2710_v2  ;;  %v2402_v9 = vpack.c.bf16 %v124_v8, %v123_v5 }
   0x4   :  { %v2399_v7 = vpack.c.bf16 %v122_v4, %v121_v3  ;;  %2419 = vmatprep.subr.bf16.mxu0 %v2712_v6 }
   0x6   :  { %2400 = vmatpush3.bf16.msra.mxu1 %v2399_v7 }
   0x7   :  { %15 = vsyncpa [#allocation3], 0  ;;  %2401 = vmatprep.subr.bf16.mxu1 %v2712_v6  ;;  %v125_v10 = vld [vmem:[%s3479_s5 + $0x20] sm:$0xff]  ;;  %v126_v11 = vld [vmem:[%s3479_s5 + $0x28] sm:$0xff]  ;;  %2220 = vmatprep.mubr.msk.f32.mxu0 %vm2711_vm1, %v2710_v2  ;;  %s2713_s17 = smov 124   ;;  %vm138_vm2 = vcmask 654336  }
   0x8   :  { %v2405_v12 = vpack.c.bf16 %v126_v11, %v125_v10  ;;  %v127_v13 = vld [vmem:[%s3479_s5 + $0x30] sm:$0xff]  ;;  %v128_v14 = vld [vmem:[%s3479_s5 + $0x38] sm:$0xff]  ;;  %v129_v16 = vld [vmem:[%s3479_s5 + $0x40] sm:$0xff]  ;;  %vm445_vm3 = vcmask 1043456   ;;  %vm271_vm4 = vcmask 326656   ;;  %s2715_s20 = smov 88  }
   0x9   :  { %v2408_v15 = vpack.c.bf16 %v128_v14, %v127_v13  ;;  %v130_v17 = vld [vmem:[%s3479_s5 + $0x48] sm:$0xff]  ;;  %v2827_v19 = vld [vmem:[%s3474_s0] sm:$0xff]  ;;  %v235_v28 = vld [vmem:[%s3480_s6 + $0xb0] sm:$0xff]  ;;  %vm441_vm5 = vcmask 31744   ;;  %vm555_vm6 = vcmask 588800   ;;  %s2716_s5 = smov 116  }
   0xa   :  { %2403 = vmatpush3.bf16.msra.mxu1 %v2402_v9  ;;  %v2411_v18 = vpack.c.bf16 %v130_v17, %v129_v16  ;;  %779 = vrot.lane.b32.xlu0 %v2827_v19, %s2713_s17  ;;  %v1983_v20 = vld [vmem:[%s3483_s9 + $0x2] ss:$0 sm:$0xff]  ;;  %v234_v22 = vld [vmem:[%s3480_s6 + $0xa8] sm:$0xff]  ;;  %v236_v29 = vld [vmem:[%s3480_s6 + $0xb8] sm:$0xff]  ;;  %s2714_s17 = smov 120   ;;  %vm1701_vm7 = vcmask 818176  }
   0xb   :  { %2404 = vmatprep.subr.bf16.mxu1 %v2712_v6  ;;  %v233_v21 = vld [vmem:[%s3480_s6 + $0xa0] sm:$0xff]  ;;  %v2417_v30 = vpack.c.bf16 %v236_v29, %v235_v28  ;;  %v2007_v34 = vld [vmem:[%s3480_s6 + $0x168] sm:$0xff]  ;;  %v2008_v35 = vld [vmem:[%s3480_s6 + $0x170] sm:$0xff]  ;;  %s2717_s18 = smov 20   ;;  %vm1881_vm8 = vcmask 162816  }
   0xc   :  { %v2414_v26 = vpack.c.bf16 %v234_v22, %v233_v21  ;;  %v237_v31 = vld [vmem:[%s3480_s6 + $0xc0] sm:$0xff]  ;;  %v2009_v36 = vld [vmem:[%s3480_s6 + $0x178] sm:$0xff]  ;;  %v2420_v37 = vpack.c.bf16 %v2008_v35, %v2007_v34  ;;  %v2011_v40 = vld [vmem:[%s3480_s6 + $0x188] sm:$0xff] }
   0xd   :  { %v2855_v32 = vld [vmem:[%s3476_s2] sm:$0xff]  ;;  %v524_v47 = vld [vmem:[%s3478_s4 + $0x8] sm:$0xff]  ;;  %v525_v50 = vld [vmem:[%s3478_s4 + $0x10] sm:$0xff] }
   0xe   :  { %2406 = vmatpush3.bf16.msra.mxu1 %v2405_v12  ;;  %v2859_v33 = vcombine.high %v2855_v32, %v2855_v32  ;;  %v2010_v38 = vld [vmem:[%s3480_s6 + $0x180] sm:$0xff]  ;;  %2421 = vmatpush3.bf16.msra.mxu0 %v2420_v37  ;;  %v526_v51 = vld [vmem:[%s3478_s4 + $0x18] sm:$0xff]  ;;  %v528_v54 = vld [vmem:[%s3478_s4 + $0x28] sm:$0xff] }
   0xf   :  { %2407 = vmatprep.subr.bf16.mxu1 %v2712_v6  ;;  %v2423_v39 = vpack.c.bf16 %v2010_v38, %v2009_v36  ;;  %2422 = vmatprep.subr.bf16.mxu0 %v2712_v6  ;;  %v1985_v41 = vld [vmem:[%s3483_s9 + $0x4] ss:$0 sm:$0xff]  ;;  %v2915_v52 = vpack.c.bf16 %v526_v51, %v525_v50  ;;  %v529_v56 = vld [vmem:[%s3478_s4 + $0x30] sm:$0xff]  ;;  %v530_v57 = vld [vmem:[%s3478_s4 + $0x38] sm:$0xff] }
  0x10   :  { %1079 = vrot.lane.b32.xlu0 %v2827_v19, %s2714_s17  ;;  %v523_v46 = vld [vmem:[%s3478_s4] sm:$0xff]  ;;  %v2935_v58 = vpack.c.bf16 %v530_v57, %v529_v56  ;;  %v532_v60 = vld [vmem:[%s3478_s4 + $0x48] sm:$0xff]  ;;  %v533_v62 = vld [vmem:[%s3478_s4 + $0x50] sm:$0xff] }
  0x11   :  { %v2904_v49 = vpack.c.bf16 %v524_v47, %v523_v46  ;;  %v527_v53 = vld [vmem:[%s3478_s4 + $0x20] sm:$0xff]  ;;  %v534_v63 = vld [vmem:[%s3478_s4 + $0x58] sm:$0xff]  ;;  %v536_v3 = vld [vmem:[%s3478_s4 + $0x68] sm:$0xff] }
  0x12   :  { %2409 = vmatpush3.bf16.msra.mxu1 %v2408_v15  ;;  %2424 = vmatpush3.bf16.msra.mxu0 %v2423_v39  ;;  %v2925_v55 = vpack.c.bf16 %v528_v54, %v527_v53  ;;  %v531_v59 = vld [vmem:[%s3478_s4 + $0x40] sm:$0xff]  ;;  %v2955_v0 = vpack.c.bf16 %v534_v63, %v533_v62  ;;  %v537_v5 = vld [vmem:[%s3478_s4 + $0x70] sm:$0xff]  ;;  %v538_v7 = vld [vmem:[%s3478_s4 + $0x78] sm:$0xff] }
  0x13   :  { %2410 = vmatprep.subr.bf16.mxu1 %v2712_v6  ;;  %2218 = vmatprep.subr.mxu0 %v2710_v2  ;;  %v2945_v61 = vpack.c.bf16 %v532_v60, %v531_v59  ;;  %v535_v1 = vld [vmem:[%s3478_s4 + $0x60] sm:$0xff]  ;;  %v2975_v8 = vpack.c.bf16 %v538_v7, %v537_v5  ;;  %v540_v10 = vld [vmem:[%s3478_s4 + $0x88] sm:$0xff]  ;;  %v541_v12 = vld [vmem:[%s3478_s4 + $0x90] sm:$0xff] }
  0x14   :  { %v2965_v4 = vpack.c.bf16 %v536_v3, %v535_v1  ;;  %v539_v9 = vld [vmem:[%s3478_s4 + $0x80] sm:$0xff]  ;;  %v542_v13 = vld [vmem:[%s3478_s4 + $0x98] sm:$0xff]  ;;  %v544_v16 = vld [vmem:[%s3478_s4 + $0xa8] sm:$0xff] }
  0x15   :  { %v2985_v11 = vpack.c.bf16 %v540_v10, %v539_v9  ;;  %v2995_v14 = vpack.c.bf16 %v542_v13, %v541_v12  ;;  %v543_v15 = vld [vmem:[%s3478_s4 + $0xa0] sm:$0xff]  ;;  %v214_v39 = vld [vmem:[%s3480_s6 + $0x8] sm:$0xff]  ;;  %v215_v53 = vld [vmem:[%s3480_s6 + $0x10] sm:$0xff] }
  0x16   :  { %2412 = vmatpush3.bf16.msra.mxu1 %v2411_v18  ;;  %2219 = vmatpush3.msra.mxu0 %v2011_v40  ;;  %v3005_v17 = vpack.c.bf16 %v544_v16, %v543_v15  ;;  %v545_v18 = vld [vmem:[%s3478_s4 + $0xb0] sm:$0xff]  ;;  %v3022_v22 = vld [vmem:[%s3478_s4 + $0xc0] sm:$0xff]  ;;  %v216_v54 = vld [vmem:[%s3480_s6 + $0x18] sm:$0xff] }
  0x17   :  { %2413 = vmatprep.subr.bf16.mxu1 %v2712_v6  ;;  %2425 = vmatprep.subr.bf16.mxu0 %v2712_v6  ;;  %v213_v38 = vld [vmem:[%s3480_s6] sm:$0xff]  ;;  %v2465_v56 = vpack.c.bf16 %v216_v54, %v215_v53  ;;  %v1987_v60 = vld [vmem:[%s3480_s6 + $0xc8] sm:$0xff]  ;;  %v1988_v62 = vld [vmem:[%s3480_s6 + $0xd0] sm:$0xff] }
  0x18   :  { %v217_v57 = vld [vmem:[%s3480_s6 + $0x20] sm:$0xff]  ;;  %v2468_v5 = vpack.c.bf16 %v1988_v62, %v1987_v60  ;;  %v1989_v9 = vld [vmem:[%s3480_s6 + $0xd8] sm:$0xff]  ;;  %v2000_v53 = vld [vmem:[%s3480_s6 + $0x130] sm:$0xff] }
  0x19   :  { %v3123_v59 = vld [vmem:[%s3483_s9 + $0x3] ss:$0 sm:$0xff] }
  0x1a   :  { %v1990_v10 = vld [vmem:[%s3480_s6 + $0xe0] sm:$0xff] }
  0x1b   :  { %v2471_v16 = vpack.c.bf16 %v1990_v10, %v1989_v9  ;;  %v229_v62 = vld [vmem:[%s3480_s6 + $0x80] sm:$0xff]  ;;  %v230_v10 = vld [vmem:[%s3480_s6 + $0x88] sm:$0xff] }
  0x7c   :  { %v780_v48 = vpop.permute.xlu0 %779 }
  0x82   :  { %v1080_v51 = vpop.permute.xlu0 %1079 }
  0xd6   :  { %v116_v23 = vpop.f32.mrb[0].mxu0 }
  0xd7   :  { %v117_v24 = vadd.f32 %v1983_v20, %v116_v23  ;;  %v2173_v25 = vpop.f32.mrb[1].mxu0  ;;  %v546_v20 = vld [vmem:[%s3478_s4 + $0xb8] sm:$0xff]  ;;  %s2718_s4 = smov [#allocation2]  }
  0xd8   :  { %v3015_v21 = vpack.c.bf16 %v546_v20, %v545_v18  ;;  %s1975_s21 = sshll.u32 %s2718_s4, 4  ;;  %s1976_s21 = int_to_ptr.vmem [resolvable:$true] %s1975_s21 }
  0xd9   :  { %v120_v27 = vmax.f32 %v117_v24, 0.0  ;;  %v429_v24 = vlaneseq  ;;  %s2686_s0 = scalar_lea.vmem %s1976_s21, 128  ;;  %p2691_p1 = scmp.lt.s32.totalorder %s1976_s21, %s1976_s21 }
  0xda   :  { %p2687_p0 = scmp.ne.s32.totalorder %s1976_s21, %s2686_s0  ;;  %p2692_p2 = scmp.lt.s32.totalorder %s2686_s0, %s2686_s0 }
  0xdb   :  { %2195 = vmatmul.mubr.msk.f32.vlgmr.msra.gmra.mrb[0].mxu1 %vm138_vm2, %v120_v27  ;;  %v430_v25 = vshrl.u32 %v429_v24, 7  ;;  %v427_v27 = vld [vmem:[%s3483_s9] sm:$0x3] }
  0xdc   :  { %2415 = vmatpush3.bf16.msra.mxu1 %v2414_v26  ;;  %2207 = vmatprep.mubr.msk.f32.mxu1 %vm2711_vm1, %v2710_v2  ;;  %p2693_p3 = por %p2692_p2, %p2691_p1 }
  0xdd   :  { %2416 = vmatprep.subr.bf16.mxu1 %v2712_v6  ;;  %v431_v26 = vsub.s32 0, %v430_v25  ;;  %v435_v28 = vsub.s32 1, %v430_v25 }
  0xde   :  { %p2694_p4 = pnand %p2693_p3, %p2687_p0 }
  0xdf   :  { %v3061_v34 = vrot.slane %v427_v27, %v435_v28 }
  0xe0   :  { %2418 = vmatpush3.bf16.msra.mxu1 %v2417_v30 }
  0xe1   :  { %2205 = vmatprep.subr.mxu1 %v2710_v2 }
  0xe4   :  { %2206 = vmatpush3.msra.mxu1 %v237_v31  ;;  %v3059_v31 = vrot.slane %v427_v27, %v431_v26  ;;  %v1991_v26 = vld [vmem:[%s3480_s6 + $0xe8] sm:$0xff] }
  0xe5   :  { %2016 = vmatprep.subr.msk.mxu1 %vm445_vm3, %v2859_v33 }
 0x1ae   :  { %v208_v42 = vpop.f32.mrb[0].mxu1 }
 0x1af   :  { %v209_v43 = vadd.f32 %v1985_v41, %v208_v42  ;;  %v2196_v44 = vpop.f32.mrb[1].mxu1 }
 0x1b1   :  { %v212_v45 = vmax.f32 %v209_v43, 0.0  ;;  %v2462_v43 = vpack.c.bf16 %v214_v39, %v213_v38  ;;  %v225_v38 = vld [vmem:[%s3480_s6 + $0x60] sm:$0xff]  ;;  %v226_v39 = vld [vmem:[%s3480_s6 + $0x68] sm:$0xff] }
 0x1b3   :  { %352 = vrot.lane.b32.xlu1 %v212_v45, %s2715_s20  ;;  %2208 = vmatmul.mubr.msk.f32.vlgmr.msra.gmra.mrb[2].mxu1 %vm271_vm4, %v212_v45 }
 0x1b4   :  { %2017 = vmatpush1.msk.msra.mxu1 %vm445_vm3, %v2855_v32  ;;  %514 = vmatprep.mubr.f32.mxu1 %v2710_v2 }
 0x1b5   :  { %2023 = vmatprep.subr.msk.mxu1 %vm445_vm3, %v2859_v33 }
 0x1b7   :  { %2018 = vmatmul.mubr.msk.f32.vlgmr.msra.gmra.mrb[4].mxu1 %vm441_vm5, %v2827_v19 }
 0x1b8   :  { %2024 = vmatpush1.msk.msra.mxu1 %vm445_vm3, %v2855_v32  ;;  %847 = vmatprep.mubr.f32.mxu1 %v2710_v2 }
 0x1b9   :  { %2473 = vmatprep.subr.bf16.mxu1 %v2712_v6 }
 0x1bb   :  { %2025 = vmatmul.mubr.msk.f32.vlgmr.msra.gmra.mrb[6].mxu1 %vm441_vm5, %v780_v48 }
 0x1bc   :  { %2475 = vmatpush1.bf16.msra.mxu1 %v2904_v49 }
 0x1bd   :  { %2476 = vmatprep.subr.bf16.mxu1 %v2712_v6 }
 0x1c0   :  { %2478 = vmatpush1.bf16.msra.mxu1 %v2915_v52 }
 0x1c1   :  { %2479 = vmatprep.subr.bf16.mxu1 %v2712_v6 }
 0x1c4   :  { %2481 = vmatpush1.bf16.msra.mxu1 %v2925_v55 }
 0x1c5   :  { %2482 = vmatprep.subr.bf16.mxu1 %v2712_v6 }
 0x1c8   :  { %2484 = vmatpush1.bf16.msra.mxu1 %v2935_v58 }
 0x1c9   :  { %2485 = vmatprep.subr.bf16.mxu1 %v2712_v6 }
 0x1cc   :  { %2487 = vmatpush1.bf16.msra.mxu1 %v2945_v61 }
 0x1cd   :  { %2488 = vmatprep.subr.bf16.mxu1 %v2712_v6 }
 0x1d0   :  { %2490 = vmatpush1.bf16.msra.mxu1 %v2955_v0 }
 0x1d1   :  { %2491 = vmatprep.subr.bf16.mxu1 %v2712_v6 }
 0x1d4   :  { %2493 = vmatpush1.bf16.msra.mxu1 %v2965_v4 }
 0x1d5   :  { %2494 = vmatprep.subr.bf16.mxu1 %v2712_v6 }
 0x1d8   :  { %2496 = vmatpush1.bf16.msra.mxu1 %v2975_v8 }
 0x1d9   :  { %2497 = vmatprep.subr.bf16.mxu1 %v2712_v6 }
 0x1dc   :  { %2499 = vmatpush1.bf16.msra.mxu1 %v2985_v11 }
 0x1dd   :  { %2500 = vmatprep.subr.bf16.mxu1 %v2712_v6 }
 0x1e0   :  { %2502 = vmatpush1.bf16.msra.mxu1 %v2995_v14 }
 0x1e1   :  { %2503 = vmatprep.subr.bf16.mxu1 %v2712_v6 }
 0x1e4   :  { %2505 = vmatpush1.bf16.msra.mxu1 %v3005_v17 }
 0x1e5   :  { %2506 = vmatprep.subr.bf16.mxu1 %v2712_v6 }
 0x1e8   :  { %2508 = vmatpush1.bf16.msra.mxu1 %v3015_v21 }
 0x1e9   :  { %907 = vmatprep.subr.mxu1 %v2710_v2 }
 0x1ec   :  { %908 = vmatpush1.msra.mxu1 %v3022_v22 }
 0x1ed   :  { %2029 = vmatprep.subr.msk.mxu1 %vm445_vm3, %v2859_v33 }
 0x225   :  { %v353_v23 = vpop.permute.xlu1 %352 }
 0x226   :  { %2221 = vmatmul.mubr.msk.f32.vlgmr.msra.gmra.mrb[2].mxu0 %vm271_vm4, %v353_v23 }
 0x227   :  { %2427 = vmatpush1.bf16.msra.mxu0 %v2904_v49 }
 0x228   :  { %2428 = vmatprep.subr.bf16.mxu0 %v2712_v6 }
 0x22b   :  { %2430 = vmatpush1.bf16.msra.mxu0 %v2915_v52 }
 0x22c   :  { %2431 = vmatprep.subr.bf16.mxu0 %v2712_v6 }
 0x22f   :  { %2433 = vmatpush1.bf16.msra.mxu0 %v2925_v55 }
 0x230   :  { %2434 = vmatprep.subr.bf16.mxu0 %v2712_v6 }
 0x233   :  { %2436 = vmatpush1.bf16.msra.mxu0 %v2935_v58 }
 0x234   :  { %2437 = vmatprep.subr.bf16.mxu0 %v2712_v6 }
 0x237   :  { %2439 = vmatpush1.bf16.msra.mxu0 %v2945_v61 }
 0x238   :  { %2440 = vmatprep.subr.bf16.mxu0 %v2712_v6 }
 0x23b   :  { %2442 = vmatpush1.bf16.msra.mxu0 %v2955_v0 }
 0x23c   :  { %2443 = vmatprep.subr.bf16.mxu0 %v2712_v6 }
 0x23f   :  { %2445 = vmatpush1.bf16.msra.mxu0 %v2965_v4 }
 0x240   :  { %2446 = vmatprep.subr.bf16.mxu0 %v2712_v6 }
 0x243   :  { %2448 = vmatpush1.bf16.msra.mxu0 %v2975_v8 }
 0x244   :  { %2449 = vmatprep.subr.bf16.mxu0 %v2712_v6 }
 0x247   :  { %2451 = vmatpush1.bf16.msra.mxu0 %v2985_v11 }
 0x248   :  { %2452 = vmatprep.subr.bf16.mxu0 %v2712_v6 }
 0x24b   :  { %2454 = vmatpush1.bf16.msra.mxu0 %v2995_v14 }
 0x24c   :  { %2455 = vmatprep.subr.bf16.mxu0 %v2712_v6 }
 0x24f   :  { %2457 = vmatpush1.bf16.msra.mxu0 %v3005_v17 }
 0x250   :  { %2458 = vmatprep.subr.bf16.mxu0 %v2712_v6 }
 0x253   :  { %2460 = vmatpush1.bf16.msra.mxu0 %v3015_v21 }
 0x254   :  { %607 = vmatprep.subr.mxu0 %v2710_v2 }
 0x257   :  { %608 = vmatpush1.msra.mxu0 %v3022_v22 }
 0x258   :  { %2461 = vmatprep.subr.bf16.mxu0 %v2712_v6 }
 0x286   :  { %v3057_v29 = vpop.f32.mrb[2].mxu1 }
 0x287   :  { %v2209_v30 = vpop.f32.mrb[3].mxu1 }
 0x288   :  { %v223_v30 = vld [vmem:[%s3480_s6 + $0x50] sm:$0xff] }
 0x28a   :  { %v516_v35 = vpop.f32.mrb[4].mxu1 }
 0x28b   :  { %v517_v36 = vadd.f32 %v516_v35, %v3059_v31  ;;  %v518_v37 = vpop.f32.mrb[5].mxu1  ;;  %v224_v35 = vld [vmem:[%s3480_s6 + $0x58] sm:$0xff] }
 0x28c   :  { %v519_v40 = vadd.f32 %v518_v37, %v3061_v34  ;;  %v2558_v37 = vpack.c.bf16 %v224_v35, %v223_v30  ;;  %v1691_v35 = vld [vmem:[%s3481_s7 + $0x50] sm:$0xff] }
 0x28d   :  { %v521_v44 = vmax.f32 %v517_v36, 0.0  ;;  %v1996_v36 = vld [vmem:[%s3480_s6 + $0x110] sm:$0xff] }
 0x28e   :  { %v522_v41 = vmax.f32 %v519_v40, 0.0  ;;  %v849_v42 = vpop.f32.mrb[6].mxu1 }
 0x28f   :  { %v850_v45 = vadd.f32 %v849_v42, %v3059_v31  ;;  %v851_v46 = vpop.f32.mrb[7].mxu1  ;;  %v227_v42 = vld [vmem:[%s3480_s6 + $0x70] sm:$0xff] }
 0x290   :  { %v852_v47 = vadd.f32 %v851_v46, %v3061_v34  ;;  %2020 = vmatprep.mubr.msk.f32.mxu0 %vm555_vm6, %v522_v41  ;;  %v2561_v41 = vpack.c.bf16 %v226_v39, %v225_v38  ;;  %v1693_v38 = vld [vmem:[%s3481_s7 + $0x60] sm:$0xf]  ;;  %v2012_v39 = vld [vmem:[%s3483_s9 + $0x5] ss:$0 sm:$0xff] }
 0x291   :  { %624 = vmatmul.mubr.f32.vlgmr.msra.gmra.mrb[4].mxu0 %v521_v44  ;;  %v854_v50 = vmax.f32 %v850_v45, 0.0  ;;  %v1998_v44 = vld [vmem:[%s3480_s6 + $0x120] sm:$0xff] }
 0x292   :  { %v855_v48 = vmax.f32 %v852_v47, 0.0  ;;  %2463 = vmatpush3.bf16.msra.mxu0 %v2462_v43  ;;  %2233 = vmatprep.mubr.msk.f32.mxu0 %vm2711_vm1, %v2710_v2  ;;  %v1997_v43 = vld [vmem:[%s3480_s6 + $0x118] sm:$0xff] }
 0x293   :  { %2464 = vmatprep.subr.bf16.mxu0 %v2712_v6 }
 0x294   :  { %2026 = vmatprep.mubr.msk.f32.mxu1 %vm555_vm6, %v855_v48  ;;  %v2564_v48 = vpack.c.bf16 %v1998_v44, %v1997_v43 }
 0x295   :  { %924 = vmatmul.mubr.f32.vlgmr.msra.gmra.mrb[8].mxu1 %v854_v50 }
 0x296   :  { %2030 = vmatpush1.msk.msra.mxu1 %vm445_vm3, %v2855_v32  ;;  %1147 = vmatprep.mubr.f32.mxu1 %v2710_v2 }
 0x297   :  { %2521 = vmatprep.subr.bf16.mxu1 %v2712_v6  ;;  %2466 = vmatpush3.bf16.msra.mxu0 %v2465_v56  ;;  %v2001_v56 = vld [vmem:[%s3480_s6 + $0x138] sm:$0xff] }
 0x298   :  { %2231 = vmatprep.subr.mxu0 %v2710_v2 }
 0x299   :  { %2031 = vmatmul.mubr.msk.f32.vlgmr.msra.gmra.mrb[10].mxu1 %vm441_vm5, %v1080_v51  ;;  %v1999_v51 = vld [vmem:[%s3480_s6 + $0x128] sm:$0xff] }
 0x29a   :  { %2523 = vmatpush1.bf16.msra.mxu1 %v2904_v49  ;;  %v2567_v54 = vpack.c.bf16 %v2000_v53, %v1999_v51  ;;  %v2048_v51 = vld [vmem:[%s3481_s7 + $0x88] sm:$0xff]  ;;  %v2049_v53 = vld [vmem:[%s3481_s7 + $0x90] sm:$0xff] }
 0x29b   :  { %2524 = vmatprep.subr.bf16.mxu1 %v2712_v6  ;;  %2232 = vmatpush3.msra.mxu0 %v217_v57 }
 0x29c   :  { %2467 = vmatprep.subr.bf16.mxu0 %v2712_v6 }
 0x29e   :  { %2526 = vmatpush1.bf16.msra.mxu1 %v2915_v52 }
 0x29f   :  { %2527 = vmatprep.subr.bf16.mxu1 %v2712_v6 }
 0x2a2   :  { %2529 = vmatpush1.bf16.msra.mxu1 %v2925_v55 }
 0x2a3   :  { %2530 = vmatprep.subr.bf16.mxu1 %v2712_v6 }
 0x2a6   :  { %2532 = vmatpush1.bf16.msra.mxu1 %v2935_v58 }
 0x2a7   :  { %2533 = vmatprep.subr.bf16.mxu1 %v2712_v6 }
 0x2aa   :  { %2535 = vmatpush1.bf16.msra.mxu1 %v2945_v61 }
 0x2ab   :  { %2536 = vmatprep.subr.bf16.mxu1 %v2712_v6 }
 0x2ae   :  { %2538 = vmatpush1.bf16.msra.mxu1 %v2955_v0 }
 0x2af   :  { %2539 = vmatprep.subr.bf16.mxu1 %v2712_v6 }
 0x2b2   :  { %2541 = vmatpush1.bf16.msra.mxu1 %v2965_v4 }
 0x2b3   :  { %2542 = vmatprep.subr.bf16.mxu1 %v2712_v6 }
 0x2b6   :  { %2544 = vmatpush1.bf16.msra.mxu1 %v2975_v8 }
 0x2b7   :  { %2545 = vmatprep.subr.bf16.mxu1 %v2712_v6 }
 0x2ba   :  { %2547 = vmatpush1.bf16.msra.mxu1 %v2985_v11 }
 0x2bb   :  { %2548 = vmatprep.subr.bf16.mxu1 %v2712_v6 }
 0x2be   :  { %2550 = vmatpush1.bf16.msra.mxu1 %v2995_v14 }
 0x2bf   :  { %2551 = vmatprep.subr.bf16.mxu1 %v2712_v6 }
 0x2c2   :  { %2553 = vmatpush1.bf16.msra.mxu1 %v3005_v17 }
 0x2c3   :  { %2554 = vmatprep.subr.bf16.mxu1 %v2712_v6 }
 0x2c6   :  { %2556 = vmatpush1.bf16.msra.mxu1 %v3015_v21 }
 0x2c7   :  { %1207 = vmatprep.subr.mxu1 %v2710_v2 }
 0x2ca   :  { %1208 = vmatpush1.msra.mxu1 %v3022_v22 }
 0x2cb   :  { %2569 = vmatprep.subr.bf16.mxu1 %v2712_v6 }
 0x364   :  { %v625_v63 = vpop.f32.mrb[4].mxu0 }
 0x365   :  { %v626_v1 = vadd.f32 %v3123_v59, %v625_v63  ;;  %v627_v3 = vpop.f32.mrb[5].mxu0 }
 0x367   :  { %v629_v7 = vmax.f32 %v626_v1, 0.0 }
 0x368   :  { %v925_v12 = vpop.f32.mrb[8].mxu1 }
 0x369   :  { %v3139_v13 = vadd.f32 %v3123_v59, %v925_v12  ;;  %v927_v15 = vpop.f32.mrb[9].mxu1  ;;  %704 = vrot.lane.b32.xlu1 %v629_v7, %s2715_s20  ;;  %2234 = vmatmul.mubr.msk.f32.vlgmr.msra.gmra.mrb[6].mxu0 %vm271_vm4, %v629_v7  ;;  %v231_v12 = vld [vmem:[%s3480_s6 + $0x90] sm:$0xff] }
 0x36a   :  { %2469 = vmatpush3.bf16.msra.mxu0 %v2468_v5  ;;  %2246 = vmatprep.mubr.msk.f32.mxu0 %vm2711_vm1, %v2710_v2  ;;  %v2003_v15 = vld [vmem:[%s3480_s6 + $0x148] sm:$0xff] }
 0x36b   :  { %v929_v18 = vmax.f32 %v3139_v13, 0.0  ;;  %2470 = vmatprep.subr.bf16.mxu0 %v2712_v6  ;;  %v2002_v13 = vld [vmem:[%s3480_s6 + $0x140] sm:$0xff] }
 0x36c   :  { %v1149_v20 = vpop.f32.mrb[10].mxu1 }
 0x36d   :  { %v1150_v23 = vadd.f32 %v1149_v20, %v3059_v31  ;;  %v1151_v24 = vpop.f32.mrb[11].mxu1  ;;  %1004 = vrot.lane.b32.xlu0 %v929_v18, %s2715_s20 }
 0x36e   :  { %v1152_v25 = vadd.f32 %v1151_v24, %v3061_v34  ;;  %2472 = vmatpush3.bf16.msra.mxu0 %v2471_v16 }
 0x36f   :  { %2244 = vmatprep.subr.mxu0 %v2710_v2  ;;  %v1154_v28 = vmax.f32 %v1150_v23, 0.0  ;;  %v2612_v23 = vpack.c.bf16 %v2003_v15, %v2002_v13  ;;  %v1884_v13 = vld [vmem:[%s3482_s8 + $0x8] sm:$0xff]  ;;  %v1885_v15 = vld [vmem:[%s3482_s8 + $0x10] sm:$0xff] }
 0x370   :  { %v1155_v27 = vmax.f32 %v1152_v25, 0.0  ;;  %v2004_v25 = vld [vmem:[%s3480_s6 + $0x150] sm:$0xff] }
 0x371   :  { %1379 = vrot.lane.b32.xlu0 %v2827_v19, %s2716_s5 }
 0x372   :  { %2032 = vmatprep.mubr.msk.f32.mxu1 %vm555_vm6, %v1155_v27  ;;  %2245 = vmatpush3.msra.mxu0 %v1991_v26  ;;  %v2005_v26 = vld [vmem:[%s3480_s6 + $0x158] sm:$0xff] }
 0x373   :  { %1224 = vmatmul.mubr.f32.vlgmr.msra.gmra.mrb[12].mxu1 %v1154_v28  ;;  %2509 = vmatprep.subr.bf16.mxu0 %v2712_v6  ;;  %v2615_v27 = vpack.c.bf16 %v2005_v26, %v2004_v25  ;;  %v1681_v28 = vld [vmem:[%s3481_s7] sm:$0xff]  ;;  %v2057_v26 = vld [vmem:[%s3483_s9 + $0x8] ss:$0 sm:$0xff] }
 0x374   :  { %2571 = vmatpush1.bf16.msra.mxu1 %v2904_v49  ;;  %v218_v49 = vld [vmem:[%s3480_s6 + $0x28] sm:$0xff]  ;;  %v1887_v25 = vld [vmem:[%s3482_s8 + $0x20] sm:$0xff] }
 0x375   :  { %2572 = vmatprep.subr.bf16.mxu1 %v2712_v6 }
 0x378   :  { %2574 = vmatpush1.bf16.msra.mxu1 %v2915_v52  ;;  %v219_v52 = vld [vmem:[%s3480_s6 + $0x30] sm:$0xff] }
 0x379   :  { %2575 = vmatprep.subr.bf16.mxu1 %v2712_v6 }
 0x37c   :  { %2577 = vmatpush1.bf16.msra.mxu1 %v2925_v55  ;;  %v2510_v55 = vpack.c.bf16 %v219_v52, %v218_v49  ;;  %v1682_v49 = vld [vmem:[%s3481_s7 + $0x8] sm:$0xff] }
 0x37d   :  { %2578 = vmatprep.subr.bf16.mxu1 %v2712_v6  ;;  %v2618_v52 = vpack.c.bf16 %v1682_v49, %v1681_v28 }
 0x380   :  { %2580 = vmatpush1.bf16.msra.mxu1 %v2935_v58  ;;  %v220_v58 = vld [vmem:[%s3480_s6 + $0x38] sm:$0xff] }
 0x381   :  { %2581 = vmatprep.subr.bf16.mxu1 %v2712_v6 }
 0x384   :  { %2583 = vmatpush1.bf16.msra.mxu1 %v2945_v61  ;;  %v221_v61 = vld [vmem:[%s3480_s6 + $0x40] sm:$0xff] }
 0x385   :  { %2584 = vmatprep.subr.bf16.mxu1 %v2712_v6  ;;  %v2513_v19 = vpack.c.bf16 %v221_v61, %v220_v58  ;;  %v1684_v58 = vld [vmem:[%s3481_s7 + $0x18] sm:$0xff] }
 0x388   :  { %2586 = vmatpush1.bf16.msra.mxu1 %v2955_v0 }
 0x389   :  { %2587 = vmatprep.subr.bf16.mxu1 %v2712_v6 }
 0x38c   :  { %2589 = vmatpush1.bf16.msra.mxu1 %v2965_v4  ;;  %v1992_v4 = vld [vmem:[%s3480_s6 + $0xf0] sm:$0xff] }
 0x38d   :  { %2590 = vmatprep.subr.bf16.mxu1 %v2712_v6 }
 0x390   :  { %2592 = vmatpush1.bf16.msra.mxu1 %v2975_v8  ;;  %v1993_v8 = vld [vmem:[%s3480_s6 + $0xf8] sm:$0xff] }
 0x391   :  { %2593 = vmatprep.subr.bf16.mxu1 %v2712_v6 }
 0x394   :  { %2595 = vmatpush1.bf16.msra.mxu1 %v2985_v11  ;;  %v222_v11 = vld [vmem:[%s3480_s6 + $0x48] sm:$0xff] }
 0x395   :  { %2596 = vmatprep.subr.bf16.mxu1 %v2712_v6 }
 0x398   :  { %2598 = vmatpush1.bf16.msra.mxu1 %v2995_v14  ;;  %v2516_v14 = vpack.c.bf16 %v1993_v8, %v1992_v4  ;;  %v1686_v4 = vld [vmem:[%s3481_s7 + $0x28] sm:$0xff] }
 0x399   :  { %2599 = vmatprep.subr.bf16.mxu1 %v2712_v6 }
 0x39c   :  { %2601 = vmatpush1.bf16.msra.mxu1 %v3005_v17  ;;  %v1994_v17 = vld [vmem:[%s3480_s6 + $0x100] sm:$0xff] }
 0x39d   :  { %2602 = vmatprep.subr.bf16.mxu1 %v2712_v6 }
 0x3a0   :  { %2604 = vmatpush1.bf16.msra.mxu1 %v3015_v21  ;;  %v1995_v21 = vld [vmem:[%s3480_s6 + $0x108] sm:$0xff] }
 0x3a1   :  { %1507 = vmatprep.subr.mxu1 %v2710_v2 }
 0x3a4   :  { %1508 = vmatpush1.msra.mxu1 %v3022_v22  ;;  %v2519_v22 = vpack.c.bf16 %v1995_v21, %v1994_v17  ;;  %v1689_v21 = vld [vmem:[%s3481_s7 + $0x40] sm:$0xff] }
 0x3a5   :  { %2653 = vmatprep.subr.bf16.mxu1 %v2712_v6 }
 0x3db   :  { %v705_v0 = vpop.permute.xlu1 %704 }
 0x3dc   :  { %2247 = vmatmul.mubr.msk.f32.vlgmr.msra.gmra.mrb[2].mxu0 %vm271_vm4, %v705_v0 }
 0x3dd   :  { %2511 = vmatpush3.bf16.msra.mxu0 %v2510_v55  ;;  %2259 = vmatprep.mubr.msk.f32.mxu0 %vm2711_vm1, %v2710_v2  ;;  %v1683_v55 = vld [vmem:[%s3481_s7 + $0x10] sm:$0xff] }
 0x3de   :  { %2512 = vmatprep.subr.bf16.mxu0 %v2712_v6  ;;  %v2621_v0 = vpack.c.bf16 %v1684_v58, %v1683_v55 }
 0x3df   :  { %v1005_v40 = vpop.permute.xlu0 %1004 }
 0x3e1   :  { %2514 = vmatpush3.bf16.msra.mxu0 %v2513_v19  ;;  %v1685_v19 = vld [vmem:[%s3481_s7 + $0x20] sm:$0xff] }
 0x3e2   :  { %2257 = vmatprep.subr.mxu0 %v2710_v2  ;;  %v2624_v8 = vpack.c.bf16 %v1686_v4, %v1685_v19 }
 0x3e3   :  { %v1380_v60 = vpop.permute.xlu0 %1379 }
 0x3e5   :  { %2258 = vmatpush3.msra.mxu0 %v222_v11  ;;  %v1687_v11 = vld [vmem:[%s3481_s7 + $0x30] sm:$0xff] }
 0x3e6   :  { %2260 = vmatmul.mubr.msk.f32.vlgmr.msra.gmra.mrb[6].mxu0 %vm271_vm4, %v929_v18  ;;  %2515 = vmatprep.subr.bf16.mxu0 %v2712_v6 }
 0x3e7   :  { %2517 = vmatpush3.bf16.msra.mxu0 %v2516_v14  ;;  %2272 = vmatprep.mubr.msk.f32.mxu0 %vm2711_vm1, %v2710_v2  ;;  %v1688_v14 = vld [vmem:[%s3481_s7 + $0x38] sm:$0xff] }
 0x3e8   :  { %2518 = vmatprep.subr.bf16.mxu0 %v2712_v6  ;;  %v2627_v17 = vpack.c.bf16 %v1688_v14, %v1687_v11 }
 0x3eb   :  { %2520 = vmatpush3.bf16.msra.mxu0 %v2519_v22  ;;  %v1690_v22 = vld [vmem:[%s3481_s7 + $0x48] sm:$0xff] }
 0x3ec   :  { %2270 = vmatprep.subr.mxu0 %v2710_v2  ;;  %v2630_v30 = vpack.c.bf16 %v1690_v22, %v1689_v21 }
 0x3ef   :  { %2271 = vmatpush3.msra.mxu0 %v1996_v36  ;;  %v1692_v36 = vld [vmem:[%s3481_s7 + $0x58] sm:$0xff] }
 0x3f0   :  { %2273 = vmatmul.mubr.msk.f32.vlgmr.msra.gmra.mrb[2].mxu0 %vm271_vm4, %v1005_v40  ;;  %2557 = vmatprep.subr.bf16.mxu0 %v2712_v6  ;;  %v342_v40 = vadd.f32 %v2012_v39, %v3057_v29  ;;  %v2047_v29 = vld [vmem:[%s3481_s7 + $0x80] sm:$0xff] }
 0x3f1   :  { %2559 = vmatpush3.bf16.msra.mxu0 %v2558_v37  ;;  %2285 = vmatprep.mubr.msk.f32.mxu0 %vm2711_vm1, %v2710_v2  ;;  %v2633_v37 = vpack.c.bf16 %v1692_v36, %v1691_v35 }
 0x3f2   :  { %2560 = vmatprep.subr.bf16.mxu0 %v2712_v6 }
 0x3f5   :  { %2562 = vmatpush3.bf16.msra.mxu0 %v2561_v41  ;;  %v2044_v41 = vld [vmem:[%s3481_s7 + $0x68] sm:$0xff] }
 0x3f6   :  { %2283 = vmatprep.subr.mxu0 %v2710_v2 }
 0x3f9   :  { %2284 = vmatpush3.msra.mxu0 %v227_v42  ;;  %v2045_v42 = vld [vmem:[%s3481_s7 + $0x70] sm:$0xff] }
 0x3fa   :  { %2563 = vmatprep.subr.bf16.mxu0 %v2712_v6 }
 0x446   :  { %v1225_v45 = vpop.f32.mrb[12].mxu1 }
 0x447   :  { %v1226_v46 = vadd.f32 %v3123_v59, %v1225_v45  ;;  %v1227_v47 = vpop.f32.mrb[13].mxu1 }
 0x449   :  { %v1229_v50 = vmax.f32 %v1226_v46, 0.0  ;;  %v2636_v46 = vpack.c.bf16 %v2045_v42, %v2044_v41 }
 0x44b   :  { %1304 = vrot.lane.b32.xlu1 %v1229_v50, %s2715_s20  ;;  %2286 = vmatmul.mubr.msk.f32.vlgmr.msra.gmra.mrb[6].mxu0 %vm271_vm4, %v1229_v50 }
 0x44c   :  { %2565 = vmatpush3.bf16.msra.mxu0 %v2564_v48  ;;  %2298 = vmatprep.mubr.msk.f32.mxu0 %vm2711_vm1, %v2710_v2  ;;  %v2046_v48 = vld [vmem:[%s3481_s7 + $0x78] sm:$0xff] }
 0x44d   :  { %2566 = vmatprep.subr.bf16.mxu0 %v2712_v6  ;;  %v2639_v50 = vpack.c.bf16 %v2047_v29, %v2046_v48 }
 0x450   :  { %2568 = vmatpush3.bf16.msra.mxu0 %v2567_v54  ;;  %v2642_v54 = vpack.c.bf16 %v2049_v53, %v2048_v51 }
 0x451   :  { %2296 = vmatprep.subr.mxu0 %v2710_v2 }
 0x454   :  { %2297 = vmatpush3.msra.mxu0 %v2001_v56  ;;  %v2050_v56 = vld [vmem:[%s3481_s7 + $0x98] sm:$0xff] }
 0x455   :  { %2035 = vmatprep.subr.msk.mxu0 %vm445_vm3, %v2859_v33  ;;  %v228_v33 = vld [vmem:[%s3480_s6 + $0x78] sm:$0xff] }
 0x456   :  { %v2606_v63 = vpack.c.bf16 %v229_v62, %v228_v33  ;;  %v2052_v33 = vld [vmem:[%s3481_s7 + $0xa8] sm:$0xff]  ;;  %v2053_v62 = vld [vmem:[%s3481_s7 + $0xb0] sm:$0xff] }
 0x4bd   :  { %v1305_v57 = vpop.permute.xlu1 %1304 }
 0x4be   :  { %2299 = vmatmul.mubr.msk.f32.vlgmr.msra.gmra.mrb[2].mxu0 %vm271_vm4, %v1305_v57  ;;  %v2051_v57 = vld [vmem:[%s3481_s7 + $0xa0] sm:$0xff] }
 0x4bf   :  { %2036 = vmatpush1.msk.msra.mxu0 %vm445_vm3, %v2855_v32  ;;  %1447 = vmatprep.mubr.f32.mxu0 %v2710_v2 }
 0x4c0   :  { %2605 = vmatprep.subr.bf16.mxu0 %v2712_v6 }
 0x4c2   :  { %2037 = vmatmul.mubr.msk.f32.vlgmr.msra.gmra.mrb[8].mxu0 %vm441_vm5, %v1380_v60  ;;  %v2645_v60 = vpack.c.bf16 %v2051_v57, %v2050_v56 }
 0x4c3   :  { %2311 = vmatprep.mubr.msk.f32.mxu0 %vm2711_vm1, %v2710_v2  ;;  %2607 = vmatpush3.bf16.msra.mxu0 %v2606_v63  ;;  %v2648_v63 = vpack.c.bf16 %v2053_v62, %v2052_v33 }
 0x4c4   :  { %2608 = vmatprep.subr.bf16.mxu0 %v2712_v6 }
 0x595   :  { %v1449_v32 = vpop.f32.mrb[8].mxu0 }
 0x596   :  { %v1450_v1 = vadd.f32 %v1449_v32, %v3059_v31  ;;  %v1451_v3 = vpop.f32.mrb[9].mxu0  ;;  %v2609_v31 = vpack.c.bf16 %v231_v12, %v230_v10  ;;  %v2054_v32 = vld [vmem:[%s3481_s7 + $0xb8] sm:$0xff] }
 0x597   :  { %v1452_v5 = vadd.f32 %v1451_v3, %v3061_v34  ;;  %v232_v34 = vld [vmem:[%s3480_s6 + $0x98] sm:$0xff] }
 0x598   :  { %v1454_v9 = vmax.f32 %v1450_v1, 0.0  ;;  %2610 = vmatpush3.bf16.msra.mxu0 %v2609_v31  ;;  %v2055_v1 = vld [vmem:[%s3481_s7 + $0xc0] sm:$0xff] }
 0x599   :  { %v1455_v7 = vmax.f32 %v1452_v5, 0.0  ;;  %2309 = vmatprep.subr.mxu0 %v2710_v2  ;;  %v2651_v3 = vpack.c.bf16 %v2055_v1, %v2054_v32  ;;  %v2056_v5 = vld [vmem:[%s3481_s7 + $0xc8] sm:$0xf] }
 0x59b   :  { %2038 = vmatprep.mubr.msk.f32.mxu1 %vm555_vm6, %v1455_v7  ;;  %v2014_v7 = vld [vmem:[%s3483_s9 + $0x6] ss:$0 sm:$0xff] }
 0x59c   :  { %1524 = vmatmul.mubr.f32.vlgmr.msra.gmra.mrb[14].mxu1 %v1454_v9  ;;  %2310 = vmatpush3.msra.mxu0 %v232_v34  ;;  %v1883_v34 = vld [vmem:[%s3482_s8] sm:$0xff] }
 0x59d   :  { %2395 = vmatprep.mubr.msk.f32.mxu1 %vm2711_vm1, %v2710_v2  ;;  %2611 = vmatprep.subr.bf16.mxu0 %v2712_v6 }
 0x66f   :  { %v1525_v16 = vpop.f32.mrb[14].mxu1 }
 0x670   :  { %v1526_v18 = vadd.f32 %v3123_v59, %v1525_v16  ;;  %v1527_v20 = vpop.f32.mrb[15].mxu1  ;;  %v2006_v59 = vld [vmem:[%s3480_s6 + $0x160] sm:$0xff]  ;;  %v2654_v16 = vpack.c.bf16 %v1884_v13, %v1883_v34 }
 0x672   :  { %v1529_v24 = vmax.f32 %v1526_v18, 0.0  ;;  %v1886_v18 = vld [vmem:[%s3482_s8 + $0x18] sm:$0xff]  ;;  %2655 = vmatpush3.bf16.msra.mxu1 %v2654_v16 }
 0x673   :  { %v2657_v20 = vpack.c.bf16 %v1886_v18, %v1885_v15  ;;  %2656 = vmatprep.subr.bf16.mxu1 %v2712_v6 }
 0x674   :  { %1604 = vrot.lane.b32.xlu1 %v1529_v24, %s2715_s20  ;;  %2312 = vmatmul.mubr.msk.f32.vlgmr.msra.gmra.mrb[6].mxu0 %vm271_vm4, %v1529_v24 }
 0x675   :  { %2613 = vmatpush3.bf16.msra.mxu0 %v2612_v23  ;;  %2324 = vmatprep.mubr.msk.f32.mxu0 %vm2711_vm1, %v2710_v2 }
 0x676   :  { %2614 = vmatprep.subr.bf16.mxu0 %v2712_v6  ;;  %2658 = vmatpush3.bf16.msra.mxu1 %v2657_v20 }
 0x677   :  { %2393 = vmatprep.subr.mxu1 %v2710_v2 }
 0x679   :  { %2616 = vmatpush3.bf16.msra.mxu0 %v2615_v27 }
 0x67a   :  { %2322 = vmatprep.subr.mxu0 %v2710_v2  ;;  %2394 = vmatpush3.msra.mxu1 %v1887_v25 }
 0x67d   :  { %2323 = vmatpush3.msra.mxu0 %v2006_v59 }
 0x67e   :  { %2617 = vmatprep.subr.bf16.mxu0 %v2712_v6 }
 0x6e6   :  { %v1605_v61 = vpop.permute.xlu1 %1604 }
 0x6e7   :  { %2325 = vmatmul.mubr.msk.f32.vlgmr.msra.gmra.mrb[2].mxu0 %vm271_vm4, %v1605_v61  ;;  %v2060_v61 = vld [vmem:[%s3483_s9 + $0x9] ss:$0 sm:$0xff] }
 0x6e8   :  { %2619 = vmatpush3.bf16.msra.mxu0 %v2618_v52  ;;  %2353 = vmatprep.mubr.msk.f32.mxu0 %vm2711_vm1, %v2710_v2 }
 0x6e9   :  { %2620 = vmatprep.subr.bf16.mxu0 %v2712_v6 }
 0x6ec   :  { %2622 = vmatpush3.bf16.msra.mxu0 %v2621_v0 }
 0x6ed   :  { %2623 = vmatprep.subr.bf16.mxu0 %v2712_v6 }
 0x6f0   :  { %2625 = vmatpush3.bf16.msra.mxu0 %v2624_v8 }
 0x6f1   :  { %2626 = vmatprep.subr.bf16.mxu0 %v2712_v6 }
 0x6f4   :  { %2628 = vmatpush3.bf16.msra.mxu0 %v2627_v17 }
 0x6f5   :  { %2629 = vmatprep.subr.bf16.mxu0 %v2712_v6 }
 0x6f8   :  { %2631 = vmatpush3.bf16.msra.mxu0 %v2630_v30 }
 0x6f9   :  { %2632 = vmatprep.subr.bf16.mxu0 %v2712_v6 }
 0x6fc   :  { %2634 = vmatpush3.bf16.msra.mxu0 %v2633_v37 }
 0x6fd   :  { %2351 = vmatprep.subr.mxu0 %v2710_v2 }
 0x700   :  { %2352 = vmatpush3.msk.msra.mxu0 %vm445_vm3, %v1693_v38 }
 0x701   :  { %2635 = vmatprep.subr.bf16.mxu0 %v2712_v6 }
 0x747   :  { %v1599_v43 = vpop.f32.mrb[6].mxu0 }
 0x748   :  { %v2660_v44 = vadd.f32 %v1599_v43, %v342_v40  ;;  %v2313_v45 = vpop.f32.mrb[7].mxu0 }
 0x74a   :  { %v1679_v47 = vmax.f32 %v2660_v44, 0.0 }
 0x74c   :  { %2354 = vmatmul.mubr.msk.f32.vlgmr.msra.gmra.mrb[10].mxu0 %vm1701_vm7, %v1679_v47 }
 0x74d   :  { %2637 = vmatpush3.bf16.msra.mxu0 %v2636_v46  ;;  %2382 = vmatprep.mubr.msk.f32.mxu0 %vm2711_vm1, %v2710_v2 }
 0x74e   :  { %2638 = vmatprep.subr.bf16.mxu0 %v2712_v6 }
 0x751   :  { %2640 = vmatpush3.bf16.msra.mxu0 %v2639_v50 }
 0x752   :  { %2641 = vmatprep.subr.bf16.mxu0 %v2712_v6 }
 0x755   :  { %2643 = vmatpush3.bf16.msra.mxu0 %v2642_v54 }
 0x756   :  { %2644 = vmatprep.subr.bf16.mxu0 %v2712_v6 }
 0x759   :  { %2646 = vmatpush3.bf16.msra.mxu0 %v2645_v60 }
 0x75a   :  { %2647 = vmatprep.subr.bf16.mxu0 %v2712_v6 }
 0x75d   :  { %2649 = vmatpush3.bf16.msra.mxu0 %v2648_v63 }
 0x75e   :  { %2650 = vmatprep.subr.bf16.mxu0 %v2712_v6 }
 0x761   :  { %2652 = vmatpush3.bf16.msra.mxu0 %v2651_v3 }
 0x762   :  { %2380 = vmatprep.subr.mxu0 %v2710_v2  ;;  %v2041_v2 = vld [vmem:[%s3483_s9 + $0x7] ss:$0 sm:$0xff] }
 0x765   :  { %2381 = vmatpush3.msk.msra.mxu0 %vm445_vm3, %v2056_v5 }
 0x7ba   :  { %v1674_v9 = vpop.f32.mrb[2].mxu0 }
 0x7bb   :  { %v2661_v10 = vadd.f32 %v2014_v7, %v1674_v9  ;;  %v2326_v12 = vpop.f32.mrb[3].mxu0 }
 0x7bd   :  { %v1680_v31 = vmax.f32 %v2661_v10, 0.0 }
 0x7bf   :  { %2383 = vmatmul.mubr.msk.f32.vlgmr.msra.gmra.mrb[12].mxu0 %vm1701_vm7, %v1680_v31 }
 0x81f   :  { %v1774_v23 = vpop.f32.mrb[10].mxu0 }
 0x820   :  { %v2355_v24 = vpop.f32.mrb[11].mxu0  ;;  %v1775_v6 = vadd.f32 %v2041_v2, %v1774_v23 }
 0x822   :  { %v1778_v52 = vmax.f32 %v1775_v6, 0.0 }
 0x892   :  { %v1872_v27 = vpop.f32.mrb[12].mxu0 }
 0x893   :  { %v1873_v59 = vadd.f32 %v2057_v26, %v1872_v27  ;;  %v2384_v28 = vpop.f32.mrb[13].mxu0 }
 0x895   :  { %v1876_v49 = vmax.f32 %v1873_v59, 0.0 }
 0x897   :  { %1878 = vrot.lane.b32.xlu0 %v1876_v49, %s2717_s18 }
 0x909   :  { %v1879_v55 = vpop.permute.xlu0 %1878 }
 0x90a   :  { %v1882_v58 = vsel %vm1881_vm8, %v1778_v52, %v1879_v55 }
 0x90b   :  { %2396 = vmatmul.mubr.msk.f32.vlgmr.msra.gmra.mrb[16].mxu1 %vm271_vm4, %v1882_v58 }
 0x9de   :  { %v1964_v0 = vpop.f32.mrb[16].mxu1 }
 0x9df   :  { %v1965_v19 = vadd.f32 %v2060_v61, %v1964_v0  ;;  %v2397_v4 = vpop.f32.mrb[17].mxu1 }
 0x9e1   :  { %1968 = vst [vmem:[#allocation2] sm:$0xff] %v1965_v19 }
 0x9e2   :  { %2697 = shalt.err (!%p2694_p4)
}
 0x9e3   :  { %s2698_s23 = scalar_lea.hbm %s3484_s10, 128 }
 0x9e4   :  { %p2699_p5 = scmp.ne.s32.totalorder %s3484_s10, %s2698_s23  ;;  %p2702_p6 = scmp.lt.u32.totalorder %s2698_s23, %s3484_s10 }
 0x9e6   :  { %p2704_p7 = pnand %p2702_p6, %p2699_p5 }
 0x9e8   :  { %2707 = shalt.err (!%p2704_p7)
}
 0x9e9   :  { %1978 = dma.vmem_to_hbm [thread:$0]  %s1976_s21, 128, %s3484_s10, [#allocation3]  }
 0x9ea   :  { %2708 = dma.done.wait [#allocation3], 128  }
 0x9eb   :  { %2709 = vsyncadd [#allocation3], 4294967168 }
 0x9ec   :  { %1982 = vsyncpa [#allocation3], 1 }

</bundles_post_ra>
